<compile_context>
chip_gen: v6e
topology: v6e:2x2x1
jax: 0.10.0
libtpu: 0.0.40
codegen_flags: <defaults>
</compile_context>

<pallas_src>
import functools

import numpy as np
import jax
import jax.numpy as jnp
from jax import lax
from jax.experimental import pallas as pl
from jax.experimental.pallas import tpu as pltpu

D_EMB = 512        # embedding dim fixed by the module
DNN_DIM = 256      # small stand-in for dnn_dim (=2048 in the original default)
N_CLASS = 20
N_CLASS_PAD = 128  # output padded to a full lane tile, sliced back in wrapper
NEG_SLOPE = 0.01   # nn.LeakyReLU default


def _round_up(x, m):
    return -(-x // m) * m


def _leaky(x):
    return jnp.where(x > 0, x, NEG_SLOPE * x)


def _est_vmem_bytes(bb, tt, h, vt_pad):
    """VMEM plan: single-buffered bf16 weights/table, double-buffered
    lane-padded (Bb, tt, 1) index blocks, output/acc, generous activation
    temporaries (one-hot, emb, x, h in f32/bf16)."""
    m = bb * tt
    w = 2 * (vt_pad * 2 * D_EMB + D_EMB * h + 2 * h * h + h * N_CLASS_PAD)
    bias = 4 * (3 * 8 * h + 8 * N_CLASS_PAD)
    idx = 2 * 2 * bb * tt * 128 * 4          # 1 lane pads to 128 per buffer
    xlen = 2 * bb * 8 * 128 * 4
    outb = 2 * max(bb, 8) * N_CLASS_PAD * 4
    acc = max(bb, 8) * h * 4
    act = m * (3 * vt_pad + 14 * D_EMB + 10 * h)
    return w + bias + idx + xlen + outb + acc + act


def _choose_tt(bb, t_max, h, vt_pad, target_rows=1024,
               budget=40 * 1024 * 1024):
    """Largest time tile (multiple of 8) with M=bb*tt ~ target_rows rows per
    grid step that still fits the VMEM budget."""
    tt_full = _round_up(max(t_max, 1), 8)
    tt = min(tt_full, max(8, _round_up(-(-target_rows // bb), 8)))
    while tt > 8 and _est_vmem_bytes(bb, tt, h, vt_pad) > budget:
        tt = max(8, _round_up(tt // 2, 8))
    return tt


def _seq_model_kernel(ct_ref, clt_ref, xlen_ref, tbl_ref,
                      w1_ref, b1_ref, w2_ref, b2_ref,
                      w3_ref, b3_ref, w4_ref, b4_ref,
                      out_ref, acc_ref, *, t_max):
    """Grid = (batch block ["parallel"], time block ["arbitrary"]).

    Each step processes a (Bb*tt, 512) slab; acc_ref (Bb, H) carries the
    running temporal max across time blocks (f32)."""
    ti = pl.program_id(1)
    bb, tt, _ = ct_ref.shape
    m = bb * tt
    h_dim = w2_ref.shape[0]
    vt = tbl_ref.shape[0]

    @pl.when(ti == 0)
    def _():
        acc_ref[...] = jnp.full(acc_ref.shape, -jnp.inf, acc_ref.dtype)

    # absolute time index of every (b, t) row of this tile
    t_abs = ti * tt + lax.broadcasted_iota(jnp.int32, (bb, tt, 1), 1)
    # pack/pad_packed: rows with t >= x_len[b] must be zero BEFORE dense1
    # (they still contribute dense1(0) to the max, as in PyTorch).
    valid = (t_abs < xlen_ref[...]).reshape(m, 1)
    # rows with t >= t_max are pure tile padding: exclude from the max.
    pad_penalty = jnp.where(t_abs < t_max, 0.0, -1e30).astype(jnp.float32)

    # Fused in-kernel gather: one combined one-hot over the joint vocabulary
    # against a block-diagonal table gives [ct_emb | clicktime_emb] in a
    # single bf16 MXU matmul.  The length mask is folded into the one-hot.
    ct_idx = ct_ref[...].reshape(m, 1)
    ck_idx = clt_ref[...].reshape(m, 1)        # already offset by V_ct
    lane = lax.broadcasted_iota(jnp.int32, (m, vt), 1)
    oh = (((ct_idx == lane) | (ck_idx == lane)) & valid).astype(jnp.bfloat16)

    emb = jnp.dot(oh, tbl_ref[...], preferred_element_type=jnp.float32)
    x = emb[:, :D_EMB] * emb[:, D_EMB:]        # f32 elementwise (VPU)

    # dense1: Linear(512,H) -> LeakyReLU -> Linear(H,H) on the whole slab.
    h = jnp.dot(x.astype(jnp.bfloat16), w1_ref[...],
                preferred_element_type=jnp.float32) + b1_ref[...]
    h = _leaky(h)
    h = jnp.dot(h.astype(jnp.bfloat16), w2_ref[...],
                preferred_element_type=jnp.float32) + b2_ref[...]

    # temporal max inside the tile, folded into the running f32 max.
    h3 = h.reshape(bb, tt, h_dim) + pad_penalty
    acc_ref[...] = jnp.maximum(acc_ref[...], jnp.max(h3, axis=1))

    @pl.when(ti == pl.num_programs(1) - 1)
    def _():
        # dense2: Linear(H,H) -> LeakyReLU -> Linear(H,20 padded to 128)
        g = jnp.dot(acc_ref[...].astype(jnp.bfloat16), w3_ref[...],
                    preferred_element_type=jnp.float32) + b3_ref[...]
        g = _leaky(g)
        out_ref[...] = (jnp.dot(g.astype(jnp.bfloat16), w4_ref[...],
                                preferred_element_type=jnp.float32)
                        + b4_ref[...]).astype(out_ref.dtype)


def seq_model_forward(ct, clicktime, x_len, mask, params, *, target_rows=1024):
    """ct, clicktime: int (B, T); x_len: concrete lengths; mask unused
    (src_key_padding_mask for the 'tr' branch, not instantiated here)."""
    del mask  # only used by the transformer branch ('tr' not in model_name)

    ct = jnp.asarray(ct, jnp.int32)
    clicktime = jnp.asarray(clicktime, jnp.int32)
    B, T = ct.shape
    x_len_np = np.asarray(x_len).astype(np.int32)
    t_max = int(min(int(x_len_np.max()), T))   # pack/pad_packed truncation

    ect = jnp.asarray(params["embed_ct"], jnp.float32)
    eck = jnp.asarray(params["embed_clicktime"], jnp.float32)
    v_ct, v_ck = ect.shape[0], eck.shape[0]
    H = params["w2"].shape[0]

    # v7x: two TensorCores -> split the batch over a leading "parallel" grid
    # axis whenever each half is at least 8 sublanes; no-op otherwise.
    if B % 16 == 0:
        n_bblk, Bb = 2, B // 2
    else:
        n_bblk, Bb = 1, B

    vt = v_ct + v_ck
    vt_pad = _round_up(vt, 8)

    tt = _choose_tt(Bb, t_max, H, vt_pad, target_rows=target_rows)
    t_pad = _round_up(t_max, tt)
    n_tblk = t_pad // tt

    def pad_idx(a, off):                        # (B, T) -> (B, t_pad, 1) int32
        a = a[:, :t_max] + off
        a = jnp.pad(a, ((0, 0), (0, t_pad - t_max)))
        return a.reshape(B, t_pad, 1)

    ct_p = pad_idx(ct, 0)
    ck_p = pad_idx(clicktime, v_ct)             # shifted into the joint vocab
    xlen = jnp.asarray(x_len_np).reshape(B, 1, 1)

    # Block-diagonal embedding table in bf16 (MXU operand).  Out-of-range
    # indices map to a zero embedding (nn.Embedding would raise); padded rows
    # are masked inside the kernel anyway.
    table = jnp.zeros((vt_pad, 2 * D_EMB), jnp.bfloat16)
    table = table.at[:v_ct, :D_EMB].set(ect.astype(jnp.bfloat16))
    table = table.at[v_ct:vt, D_EMB:].set(eck.astype(jnp.bfloat16))

    w1 = jnp.asarray(params["w1"], jnp.bfloat16)
    w2 = jnp.asarray(params["w2"], jnp.bfloat16)
    w3 = jnp.asarray(params["w3"], jnp.bfloat16)
    b1 = jnp.asarray(params["b1"], jnp.float32)
    b2 = jnp.asarray(params["b2"], jnp.float32)
    b3 = jnp.asarray(params["b3"], jnp.float32)
    w4p = (jnp.zeros((H, N_CLASS_PAD), jnp.bfloat16)
           .at[:, :N_CLASS].set(jnp.asarray(params["w4"], jnp.bfloat16)))
    b4p = (jnp.zeros((1, N_CLASS_PAD), jnp.float32)
           .at[:, :N_CLASS].set(jnp.asarray(params["b4"], jnp.float32)))

    flops = (2 * B * t_pad * (vt_pad * 2 * D_EMB + D_EMB * H + H * H)
             + 2 * B * (H * H + H * N_CLASS_PAD))
    bytes_accessed = (ct_p.size * 4 + ck_p.size * 4 + xlen.size * 4
                      + table.size * 2
                      + (w1.size + w2.size + w3.size + w4p.size) * 2
                      + (b1.size + b2.size + b3.size + b4p.size) * 4
                      + B * N_CLASS_PAD * 4)

    vmem_est = _est_vmem_bytes(Bb, tt, H, vt_pad)
    vmem_limit = int(min(48 * 1024 * 1024,          # v7x-safe ceiling
                         max(2 * vmem_est, 16 * 1024 * 1024)))

    seq_spec = pl.BlockSpec((Bb, tt, 1), lambda bi, ti: (bi, ti, 0))
    xlen_spec = pl.BlockSpec((Bb, 1, 1), lambda bi, ti: (bi, 0, 0))
    out_spec = pl.BlockSpec((Bb, N_CLASS_PAD), lambda bi, ti: (bi, 0))

    def run(single_buffer_weights):
        def const_spec(shape):
            idx = lambda bi, ti, _n=len(shape): (0,) * _n
            if single_buffer_weights:
                # grid-invariant blocks: single-buffer to halve weight VMEM.
                return pl.BlockSpec(shape, idx, pipeline_mode=pl.Buffered(1))
            return pl.BlockSpec(shape, idx)

        call = pl.pallas_call(
            functools.partial(_seq_model_kernel, t_max=t_max),
            out_shape=jax.ShapeDtypeStruct((B, N_CLASS_PAD), jnp.float32),
            grid_spec=pltpu.PrefetchScalarGridSpec(
                num_scalar_prefetch=0,
                grid=(n_bblk, n_tblk),
                in_specs=[
                    seq_spec,                          # ct indices   (Bb,tt,1)
                    seq_spec,                          # clicktime    (Bb,tt,1)
                    xlen_spec,                         # x_len        (Bb,1,1)
                    const_spec((vt_pad, 2 * D_EMB)),   # fused table (bf16)
                    const_spec((D_EMB, H)),            # W1 (bf16)
                    const_spec((1, H)),                # b1 (f32)
                    const_spec((H, H)),                # W2 (bf16)
                    const_spec((1, H)),                # b2 (f32)
                    const_spec((H, H)),                # W3 (bf16)
                    const_spec((1, H)),                # b3 (f32)
                    const_spec((H, N_CLASS_PAD)),      # W4 (bf16, lane-padded)
                    const_spec((1, N_CLASS_PAD)),      # b4 (f32, lane-padded)
                ],
                out_specs=out_spec,
                scratch_shapes=[pltpu.VMEM((Bb, H), jnp.float32)],
            ),
            compiler_params=pltpu.CompilerParams(
                dimension_semantics=("parallel", "arbitrary"),
                vmem_limit_bytes=vmem_limit),
            cost_estimate=pl.CostEstimate(flops=int(flops), transcendentals=0,
                                          bytes_accessed=int(bytes_accessed)),
        )
        return call(ct_p, ck_p, xlen, table,
                    w1, b1, w2, b2, w3, b3, w4p, b4p)

    try:
        out = run(True)
    except Exception:
        # Fallback for JAX builds that reject single-buffered pipeline_mode.
        out = run(False)
    return out[:, :N_CLASS]


def seq_model_reference(ct, clicktime, x_len, mask, params):
    """Pure-JAX f32 reference mirroring the PyTorch forward."""
    del mask
    ct_emb = params["embed_ct"][ct].astype(jnp.float32)
    clt_emb = params["embed_clicktime"][clicktime].astype(jnp.float32)
    out_emb = ct_emb * clt_emb
    x_len_np = np.asarray(x_len)
    t_max = int(x_len_np.max())
    out_emb = out_emb[:, :t_max]
    lm = (jnp.arange(t_max)[None, :] < jnp.asarray(x_len_np)[:, None]
          ).astype(jnp.float32)[:, :, None]
    out_emb = out_emb * lm                                  # pad_packed zeros
    h = _leaky(out_emb @ params["w1"] + params["b1"]) @ params["w2"] + params["b2"]
    m = jnp.max(h, axis=1)
    g = _leaky(m @ params["w3"] + params["b3"]) @ params["w4"] + params["b4"]
    return g


def init_params(key, vocab_ct, vocab_ck):
    ks = jax.random.split(key, 6)

    def linear(k, fin, fout):
        kw, kb = jax.random.split(k)
        bound = 1.0 / np.sqrt(fin)
        w = jax.random.uniform(kw, (fin, fout), jnp.float32, -bound, bound)
        b = jax.random.uniform(kb, (1, fout), jnp.float32, -bound, bound)
        return w, b

    w1, b1 = linear(ks[0], D_EMB, DNN_DIM)
    w2, b2 = linear(ks[1], DNN_DIM, DNN_DIM)
    w3, b3 = linear(ks[2], DNN_DIM, DNN_DIM)
    w4, b4 = linear(ks[3], DNN_DIM, N_CLASS)
    return {
        "embed_ct": jax.random.normal(ks[4], (vocab_ct, D_EMB), jnp.float32),
        "embed_clicktime": jax.random.normal(ks[5], (vocab_ck, D_EMB), jnp.float32),
        "w1": w1, "b1": b1, "w2": w2, "b2": b2,
        "w3": w3, "b3": b3, "w4": w4, "b4": b4,
    }


if __name__ == "__main__":
    B, T = 2, 8
    VOCAB_CT, VOCAB_CK = 32, 16

    key = jax.random.PRNGKey(0)
    kp, kc, kk = jax.random.split(key, 3)
    params = init_params(kp, VOCAB_CT, VOCAB_CK)

    ct = jax.random.randint(kc, (B, T), 0, VOCAB_CT, dtype=jnp.int32)
    clicktime = jax.random.randint(kk, (B, T), 0, VOCAB_CK, dtype=jnp.int32)
    x_len = np.array([7, 4], dtype=np.int32)            # ragged lengths
    pad_mask = np.arange(T)[None, :] >= x_len[:, None]  # src_key_padding_mask (unused)

    out = jax.block_until_ready(
        seq_model_forward(ct, clicktime, x_len, pad_mask, params))
    ref = jax.block_until_ready(
        seq_model_reference(ct, clicktime, x_len, pad_mask, params))
    # bf16 MXU operands (weights/table/one-hot) -> loosened tolerances vs the
    # f32 reference; max/accumulator/penalty are kept in f32 inside the kernel.
    np.testing.assert_allclose(np.asarray(out), np.asarray(ref),
                               rtol=5e-2, atol=7e-2)

    # TODO(synk): LSTM/GRU/RNN and TransformerEncoder branches of seq_model are
    # not instantiated for model_name="dnn"; recurrent cells have no clean
    # single-kernel Pallas mapping here.
    print("KERNEL_OK")
</pallas_src>

<mosaic_0001>
module attributes {stable_mosaic.version = 11 : i64} {
  func.func @_seq_model_kernel(%arg0: i32, %arg1: i32, %arg2: memref<2x8x1xi32, #tpu.memory_space<vmem>>, %arg3: memref<2x8x1xi32, #tpu.memory_space<vmem>>, %arg4: memref<2x1x1xi32, #tpu.memory_space<vmem>>, %arg5: memref<48x1024xbf16, #tpu.memory_space<vmem>>, %arg6: memref<512x256xbf16, #tpu.memory_space<vmem>>, %arg7: memref<1x256xf32, #tpu.memory_space<vmem>>, %arg8: memref<256x256xbf16, #tpu.memory_space<vmem>>, %arg9: memref<1x256xf32, #tpu.memory_space<vmem>>, %arg10: memref<256x256xbf16, #tpu.memory_space<vmem>>, %arg11: memref<1x256xf32, #tpu.memory_space<vmem>>, %arg12: memref<256x128xbf16, #tpu.memory_space<vmem>>, %arg13: memref<1x128xf32, #tpu.memory_space<vmem>>, %arg14: memref<2x128xf32, #tpu.memory_space<vmem>>, %arg15: memref<2x256xf32, #tpu.memory_space<vmem>>) attributes {dimension_semantics = [#tpu.dimension_semantics<parallel>, #tpu.dimension_semantics<arbitrary>], iteration_bounds = array<i64: 1, 1>, scalar_prefetch = 0 : i64, scratch_operands = 1 : i64, tpu.core_type = #tpu.core_type<tc>, window_params = [{transform_indices = @transform_0, window_bounds = array<i64: 2, 8, 1>}, {transform_indices = @transform_1, window_bounds = array<i64: 2, 8, 1>}, {transform_indices = @transform_2, window_bounds = array<i64: 2, 1, 1>}, {pipeline_mode = #tpu.pipeline_mode<synchronous>, transform_indices = @transform_3, window_bounds = array<i64: 48, 1024>}, {pipeline_mode = #tpu.pipeline_mode<synchronous>, transform_indices = @transform_4, window_bounds = array<i64: 512, 256>}, {pipeline_mode = #tpu.pipeline_mode<synchronous>, transform_indices = @transform_5, window_bounds = array<i64: 1, 256>}, {pipeline_mode = #tpu.pipeline_mode<synchronous>, transform_indices = @transform_6, window_bounds = array<i64: 256, 256>}, {pipeline_mode = #tpu.pipeline_mode<synchronous>, transform_indices = @transform_7, window_bounds = array<i64: 1, 256>}, {pipeline_mode = #tpu.pipeline_mode<synchronous>, transform_indices = @transform_8, window_bounds = array<i64: 256, 256>}, {pipeline_mode = #tpu.pipeline_mode<synchronous>, transform_indices = @transform_9, window_bounds = array<i64: 1, 256>}, {pipeline_mode = #tpu.pipeline_mode<synchronous>, transform_indices = @transform_10, window_bounds = array<i64: 256, 128>}, {pipeline_mode = #tpu.pipeline_mode<synchronous>, transform_indices = @transform_11, window_bounds = array<i64: 1, 128>}, {transform_indices = @transform_12, window_bounds = array<i64: 2, 128>}]} {
    %c0_i32 = arith.constant 0 : i32
    %0 = arith.cmpi eq, %arg1, %c0_i32 : i32
    %1 = arith.extui %0 : i1 to i32
    %c0_i32_0 = arith.constant 0 : i32
    %2 = arith.cmpi ne, %1, %c0_i32_0 : i32
    scf.if %2 {
      %cst_32 = arith.constant 0xFF800000 : f32
      %63 = vector.broadcast %cst_32 : f32 to vector<2x256xf32>
      %c0_33 = arith.constant 0 : index
      %c0_34 = arith.constant 0 : index
      %64 = vector.load %arg15[%c0_33, %c0_34] : memref<2x256xf32, #tpu.memory_space<vmem>>, vector<2x256xf32>
      tpu.vector_store %arg15[%c0_33, %c0_34], %63 {strides = array<i32>} : memref<2x256xf32, #tpu.memory_space<vmem>>, vector<2x256xf32>,
    } else {
    }
    %c8_i32 = arith.constant 8 : i32
    %3 = arith.muli %arg1, %c8_i32 : i32
    %4 = tpu.iota {dimensions = array<i32: 1>} : vector<2x8x1xi32>
    %5 = vector.broadcast %3 : i32 to vector<2x8x1xi32>
    %6 = arith.addi %5, %4 : vector<2x8x1xi32>
    %c0 = arith.constant 0 : index
    %c0_1 = arith.constant 0 : index
    %c0_2 = arith.constant 0 : index
    %7 = vector.load %arg4[%c0, %c0_1, %c0_2] : memref<2x1x1xi32, #tpu.memory_space<vmem>>, vector<2x1x1xi32>
    %8 = vector.broadcast %7 : vector<2x1x1xi32> to vector<2x8x1xi32>
    %9 = arith.cmpi slt, %6, %8 : vector<2x8x1xi32>
    %10 = vector.shape_cast %9 : vector<2x8x1xi1> to vector<16x1xi1>
    %c7_i32 = arith.constant 7 : i32
    %11 = vector.broadcast %c7_i32 : i32 to vector<2x8x1xi32>
    %12 = arith.cmpi slt, %6, %11 : vector<2x8x1xi32>
    %cst = arith.constant 0.000000e+00 : f32
    %cst_3 = arith.constant -1.000000e+30 : f32
    %13 = vector.broadcast %cst : f32 to vector<2x8x1xf32>
    %14 = vector.broadcast %cst_3 : f32 to vector<2x8x1xf32>
    %15 = arith.select %12, %13, %14 : vector<2x8x1xi1>, vector<2x8x1xf32>
    %c0_4 = arith.constant 0 : index
    %c0_5 = arith.constant 0 : index
    %c0_6 = arith.constant 0 : index
    %16 = vector.load %arg2[%c0_4, %c0_5, %c0_6] : memref<2x8x1xi32, #tpu.memory_space<vmem>>, vector<2x8x1xi32>
    %17 = vector.shape_cast %16 : vector<2x8x1xi32> to vector<16x1xi32>
    %c0_7 = arith.constant 0 : index
    %c0_8 = arith.constant 0 : index
    %c0_9 = arith.constant 0 : index
    %18 = vector.load %arg3[%c0_7, %c0_8, %c0_9] : memref<2x8x1xi32, #tpu.memory_space<vmem>>, vector<2x8x1xi32>
    %19 = vector.shape_cast %18 : vector<2x8x1xi32> to vector<16x1xi32>
    %20 = tpu.iota {dimensions = array<i32: 1>} : vector<16x48xi32>
    %21 = vector.broadcast %17 : vector<16x1xi32> to vector<16x48xi32>
    %22 = arith.cmpi eq, %21, %20 : vector<16x48xi32>
    %23 = vector.broadcast %19 : vector<16x1xi32> to vector<16x48xi32>
    %24 = arith.cmpi eq, %23, %20 : vector<16x48xi32>
    %25 = arith.ori %22, %24 : vector<16x48xi1>
    %26 = vector.broadcast %10 : vector<16x1xi1> to vector<16x48xi1>
    %27 = arith.andi %25, %26 : vector<16x48xi1>
    %28 = arith.extui %27 : vector<16x48xi1> to vector<16x48xi32>
    %29 = arith.sitofp %28 : vector<16x48xi32> to vector<16x48xf32>
    %30 = arith.truncf %29 : vector<16x48xf32> to vector<16x48xbf16>
    %c0_10 = arith.constant 0 : index
    %c0_11 = arith.constant 0 : index
    %31 = vector.load %arg5[%c0_10, %c0_11] : memref<48x1024xbf16, #tpu.memory_space<vmem>>, vector<48x1024xbf16>
    %cst_12 = arith.constant dense<0.000000e+00> : vector<16x1024xf32>
    %32 = tpu.matmul %30, %31, %cst_12 {dimension_numbers = #tpu.dot_dimension_numbers<[1], [0], [0], [1], [0, 0, 1, 1], [], []>} : vector<16x48xbf16>, vector<48x1024xbf16>, vector<16x1024xf32> -> vector<16x1024xf32>
    %33 = vector.extract_strided_slice %32 {offsets = [0, 0], sizes = [16, 512], strides = [1, 1]} : vector<16x1024xf32> to vector<16x512xf32>
    %34 = vector.extract_strided_slice %32 {offsets = [0, 512], sizes = [16, 512], strides = [1, 1]} : vector<16x1024xf32> to vector<16x512xf32>
    %35 = arith.mulf %33, %34 : vector<16x512xf32>
    %36 = arith.truncf %35 : vector<16x512xf32> to vector<16x512xbf16>
    %c0_13 = arith.constant 0 : index
    %c0_14 = arith.constant 0 : index
    %37 = vector.load %arg6[%c0_13, %c0_14] : memref<512x256xbf16, #tpu.memory_space<vmem>>, vector<512x256xbf16>
    %cst_15 = arith.constant dense<0.000000e+00> : vector<16x256xf32>
    %38 = tpu.matmul %36, %37, %cst_15 {dimension_numbers = #tpu.dot_dimension_numbers<[1], [0], [0], [1], [0, 0, 1, 1], [], []>} : vector<16x512xbf16>, vector<512x256xbf16>, vector<16x256xf32> -> vector<16x256xf32>
    %c0_16 = arith.constant 0 : index
    %c0_17 = arith.constant 0 : index
    %39 = vector.load %arg7[%c0_16, %c0_17] : memref<1x256xf32, #tpu.memory_space<vmem>>, vector<1x256xf32>
    %40 = vector.broadcast %39 : vector<1x256xf32> to vector<16x256xf32>
    %41 = arith.addf %38, %40 : vector<16x256xf32>
    %cst_18 = arith.constant 0.000000e+00 : f32
    %42 = vector.broadcast %cst_18 : f32 to vector<16x256xf32>
    %43 = arith.cmpf ogt, %41, %42 : vector<16x256xf32>
    %cst_19 = arith.constant 0.00999999977 : f32
    %44 = vector.broadcast %cst_19 : f32 to vector<16x256xf32>
    %45 = arith.mulf %44, %41 : vector<16x256xf32>
    %46 = arith.select %43, %41, %45 : vector<16x256xi1>, vector<16x256xf32>
    %47 = arith.truncf %46 : vector<16x256xf32> to vector<16x256xbf16>
    %c0_20 = arith.constant 0 : index
    %c0_21 = arith.constant 0 : index
    %48 = vector.load %arg8[%c0_20, %c0_21] : memref<256x256xbf16, #tpu.memory_space<vmem>>, vector<256x256xbf16>
    %cst_22 = arith.constant dense<0.000000e+00> : vector<16x256xf32>
    %49 = tpu.matmul %47, %48, %cst_22 {dimension_numbers = #tpu.dot_dimension_numbers<[1], [0], [0], [1], [0, 0, 1, 1], [], []>} : vector<16x256xbf16>, vector<256x256xbf16>, vector<16x256xf32> -> vector<16x256xf32>
    %c0_23 = arith.constant 0 : index
    %c0_24 = arith.constant 0 : index
    %50 = vector.load %arg9[%c0_23, %c0_24] : memref<1x256xf32, #tpu.memory_space<vmem>>, vector<1x256xf32>
    %51 = vector.broadcast %50 : vector<1x256xf32> to vector<16x256xf32>
    %52 = arith.addf %49, %51 : vector<16x256xf32>
    %53 = vector.shape_cast %52 : vector<16x256xf32> to vector<2x8x256xf32>
    %54 = vector.broadcast %15 : vector<2x8x1xf32> to vector<2x8x256xf32>
    %55 = arith.addf %53, %54 : vector<2x8x256xf32>
    %c0_25 = arith.constant 0 : index
    %c0_26 = arith.constant 0 : index
    %56 = vector.load %arg15[%c0_25, %c0_26] : memref<2x256xf32, #tpu.memory_space<vmem>>, vector<2x256xf32>
    %cst_27 = arith.constant dense<0xFF800000> : vector<2x256xf32>
    %57 = vector.multi_reduction <maximumf>, %55, %cst_27 [1] : vector<2x8x256xf32> to vector<2x256xf32>
    %58 = arith.maximumf %56, %57 : vector<2x256xf32>
    %c0_28 = arith.constant 0 : index
    %c0_29 = arith.constant 0 : index
    %59 = vector.load %arg15[%c0_28, %c0_29] : memref<2x256xf32, #tpu.memory_space<vmem>>, vector<2x256xf32>
    tpu.vector_store %arg15[%c0_28, %c0_29], %58 {strides = array<i32>} : memref<2x256xf32, #tpu.memory_space<vmem>>, vector<2x256xf32>,
    %c0_i32_30 = arith.constant 0 : i32
    %60 = arith.cmpi eq, %arg1, %c0_i32_30 : i32
    %61 = arith.extui %60 : i1 to i32
    %c0_i32_31 = arith.constant 0 : i32
    %62 = arith.cmpi ne, %61, %c0_i32_31 : i32
    scf.if %62 {
      %c0_32 = arith.constant 0 : index
      %c0_33 = arith.constant 0 : index
      %63 = vector.load %arg15[%c0_32, %c0_33] : memref<2x256xf32, #tpu.memory_space<vmem>>, vector<2x256xf32>
      %64 = arith.truncf %63 : vector<2x256xf32> to vector<2x256xbf16>
      %c0_34 = arith.constant 0 : index
      %c0_35 = arith.constant 0 : index
      %65 = vector.load %arg10[%c0_34, %c0_35] : memref<256x256xbf16, #tpu.memory_space<vmem>>, vector<256x256xbf16>
      %cst_36 = arith.constant dense<0.000000e+00> : vector<2x256xf32>
      %66 = tpu.matmul %64, %65, %cst_36 {dimension_numbers = #tpu.dot_dimension_numbers<[1], [0], [0], [1], [0, 0, 1, 1], [], []>} : vector<2x256xbf16>, vector<256x256xbf16>, vector<2x256xf32> -> vector<2x256xf32>
      %c0_37 = arith.constant 0 : index
      %c0_38 = arith.constant 0 : index
      %67 = vector.load %arg11[%c0_37, %c0_38] : memref<1x256xf32, #tpu.memory_space<vmem>>, vector<1x256xf32>
      %68 = vector.broadcast %67 : vector<1x256xf32> to vector<2x256xf32>
      %69 = arith.addf %66, %68 : vector<2x256xf32>
      %cst_39 = arith.constant 0.000000e+00 : f32
      %70 = vector.broadcast %cst_39 : f32 to vector<2x256xf32>
      %71 = arith.cmpf ogt, %69, %70 : vector<2x256xf32>
      %cst_40 = arith.constant 0.00999999977 : f32
      %72 = vector.broadcast %cst_40 : f32 to vector<2x256xf32>
      %73 = arith.mulf %72, %69 : vector<2x256xf32>
      %74 = arith.select %71, %69, %73 : vector<2x256xi1>, vector<2x256xf32>
      %75 = arith.truncf %74 : vector<2x256xf32> to vector<2x256xbf16>
      %c0_41 = arith.constant 0 : index
      %c0_42 = arith.constant 0 : index
      %76 = vector.load %arg12[%c0_41, %c0_42] : memref<256x128xbf16, #tpu.memory_space<vmem>>, vector<256x128xbf16>
      %cst_43 = arith.constant dense<0.000000e+00> : vector<2x128xf32>
      %77 = tpu.matmul %75, %76, %cst_43 {dimension_numbers = #tpu.dot_dimension_numbers<[1], [0], [0], [1], [0, 0, 1, 1], [], []>} : vector<2x256xbf16>, vector<256x128xbf16>, vector<2x128xf32> -> vector<2x128xf32>
      %c0_44 = arith.constant 0 : index
      %c0_45 = arith.constant 0 : index
      %78 = vector.load %arg13[%c0_44, %c0_45] : memref<1x128xf32, #tpu.memory_space<vmem>>, vector<1x128xf32>
      %79 = vector.broadcast %78 : vector<1x128xf32> to vector<2x128xf32>
      %80 = arith.addf %77, %79 : vector<2x128xf32>
      %c0_46 = arith.constant 0 : index
      %c0_47 = arith.constant 0 : index
      %81 = vector.load %arg14[%c0_46, %c0_47] : memref<2x128xf32, #tpu.memory_space<vmem>>, vector<2x128xf32>
      tpu.vector_store %arg14[%c0_46, %c0_47], %80 {strides = array<i32>} : memref<2x128xf32, #tpu.memory_space<vmem>>, vector<2x128xf32>,
    } else {
    }
    return
  }
  func.func @transform_0(%arg0: i32, %arg1: i32) -> (i32, i32, i32) {
    %c0_i32 = arith.constant 0 : i32
    %c0_i32_0 = arith.constant 0 : i32
    return %arg0, %arg1, %c0_i32 : i32, i32, i32
  }
  func.func @transform_1(%arg0: i32, %arg1: i32) -> (i32, i32, i32) {
    %c0_i32 = arith.constant 0 : i32
    %c0_i32_0 = arith.constant 0 : i32
    return %arg0, %arg1, %c0_i32 : i32, i32, i32
  }
  func.func @transform_2(%arg0: i32, %arg1: i32) -> (i32, i32, i32) {
    %c0_i32 = arith.constant 0 : i32
    %c0_i32_0 = arith.constant 0 : i32
    %c0_i32_1 = arith.constant 0 : i32
    return %arg0, %c0_i32, %c0_i32_0 : i32, i32, i32
  }
  func.func @transform_3(%arg0: i32, %arg1: i32) -> (i32, i32) {
    %c0_i32 = arith.constant 0 : i32
    %c0_i32_0 = arith.constant 0 : i32
    %c0_i32_1 = arith.constant 0 : i32
    return %c0_i32, %c0_i32_0 : i32, i32
  }
  func.func @transform_4(%arg0: i32, %arg1: i32) -> (i32, i32) {
    %c0_i32 = arith.constant 0 : i32
    %c0_i32_0 = arith.constant 0 : i32
    %c0_i32_1 = arith.constant 0 : i32
    return %c0_i32, %c0_i32_0 : i32, i32
  }
  func.func @transform_5(%arg0: i32, %arg1: i32) -> (i32, i32) {
    %c0_i32 = arith.constant 0 : i32
    %c0_i32_0 = arith.constant 0 : i32
    %c0_i32_1 = arith.constant 0 : i32
    return %c0_i32, %c0_i32_0 : i32, i32
  }
  func.func @transform_6(%arg0: i32, %arg1: i32) -> (i32, i32) {
    %c0_i32 = arith.constant 0 : i32
    %c0_i32_0 = arith.constant 0 : i32
    %c0_i32_1 = arith.constant 0 : i32
    return %c0_i32, %c0_i32_0 : i32, i32
  }
  func.func @transform_7(%arg0: i32, %arg1: i32) -> (i32, i32) {
    %c0_i32 = arith.constant 0 : i32
    %c0_i32_0 = arith.constant 0 : i32
    %c0_i32_1 = arith.constant 0 : i32
    return %c0_i32, %c0_i32_0 : i32, i32
  }
  func.func @transform_8(%arg0: i32, %arg1: i32) -> (i32, i32) {
    %c0_i32 = arith.constant 0 : i32
    %c0_i32_0 = arith.constant 0 : i32
    %c0_i32_1 = arith.constant 0 : i32
    return %c0_i32, %c0_i32_0 : i32, i32
  }
  func.func @transform_9(%arg0: i32, %arg1: i32) -> (i32, i32) {
    %c0_i32 = arith.constant 0 : i32
    %c0_i32_0 = arith.constant 0 : i32
    %c0_i32_1 = arith.constant 0 : i32
    return %c0_i32, %c0_i32_0 : i32, i32
  }
  func.func @transform_10(%arg0: i32, %arg1: i32) -> (i32, i32) {
    %c0_i32 = arith.constant 0 : i32
    %c0_i32_0 = arith.constant 0 : i32
    %c0_i32_1 = arith.constant 0 : i32
    return %c0_i32, %c0_i32_0 : i32, i32
  }
  func.func @transform_11(%arg0: i32, %arg1: i32) -> (i32, i32) {
    %c0_i32 = arith.constant 0 : i32
    %c0_i32_0 = arith.constant 0 : i32
    %c0_i32_1 = arith.constant 0 : i32
    return %c0_i32, %c0_i32_0 : i32, i32
  }
  func.func @transform_12(%arg0: i32, %arg1: i32) -> (i32, i32) {
    %c0_i32 = arith.constant 0 : i32
    %c0_i32_0 = arith.constant 0 : i32
    return %arg0, %c0_i32 : i32, i32
  }
}

module attributes {stable_mosaic.version = 11 : i64} {
  func.func @_seq_model_kernel(%arg0: i32, %arg1: i32, %arg2: memref<2x8x1xi32, #tpu.memory_space<vmem>>, %arg3: memref<2x8x1xi32, #tpu.memory_space<vmem>>, %arg4: memref<2x1x1xi32, #tpu.memory_space<vmem>>, %arg5: memref<48x1024xbf16, #tpu.memory_space<vmem>>, %arg6: memref<512x256xbf16, #tpu.memory_space<vmem>>, %arg7: memref<1x256xf32, #tpu.memory_space<vmem>>, %arg8: memref<256x256xbf16, #tpu.memory_space<vmem>>, %arg9: memref<1x256xf32, #tpu.memory_space<vmem>>, %arg10: memref<256x256xbf16, #tpu.memory_space<vmem>>, %arg11: memref<1x256xf32, #tpu.memory_space<vmem>>, %arg12: memref<256x128xbf16, #tpu.memory_space<vmem>>, %arg13: memref<1x128xf32, #tpu.memory_space<vmem>>, %arg14: memref<2x128xf32, #tpu.memory_space<vmem>>, %arg15: memref<2x256xf32, #tpu.memory_space<vmem>>) attributes {dimension_semantics = [#tpu.dimension_semantics<parallel>, #tpu.dimension_semantics<arbitrary>], iteration_bounds = array<i64: 1, 1>, scalar_prefetch = 0 : i64, scratch_operands = 1 : i64, tpu.core_type = #tpu.core_type<tc>, window_params = [{transform_indices = @transform_0, window_bounds = array<i64: 2, 8, 1>}, {transform_indices = @transform_1, window_bounds = array<i64: 2, 8, 1>}, {transform_indices = @transform_2, window_bounds = array<i64: 2, 1, 1>}, {pipeline_mode = #tpu.pipeline_mode<synchronous>, transform_indices = @transform_3, window_bounds = array<i64: 48, 1024>}, {pipeline_mode = #tpu.pipeline_mode<synchronous>, transform_indices = @transform_4, window_bounds = array<i64: 512, 256>}, {pipeline_mode = #tpu.pipeline_mode<synchronous>, transform_indices = @transform_5, window_bounds = array<i64: 1, 256>}, {pipeline_mode = #tpu.pipeline_mode<synchronous>, transform_indices = @transform_6, window_bounds = array<i64: 256, 256>}, {pipeline_mode = #tpu.pipeline_mode<synchronous>, transform_indices = @transform_7, window_bounds = array<i64: 1, 256>}, {pipeline_mode = #tpu.pipeline_mode<synchronous>, transform_indices = @transform_8, window_bounds = array<i64: 256, 256>}, {pipeline_mode = #tpu.pipeline_mode<synchronous>, transform_indices = @transform_9, window_bounds = array<i64: 1, 256>}, {pipeline_mode = #tpu.pipeline_mode<synchronous>, transform_indices = @transform_10, window_bounds = array<i64: 256, 128>}, {pipeline_mode = #tpu.pipeline_mode<synchronous>, transform_indices = @transform_11, window_bounds = array<i64: 1, 128>}, {transform_indices = @transform_12, window_bounds = array<i64: 2, 128>}]} {
    %c0_i32 = arith.constant 0 : i32
    %0 = arith.cmpi eq, %arg1, %c0_i32 : i32
    %1 = arith.extui %0 : i1 to i32
    %c0_i32_0 = arith.constant 0 : i32
    %2 = arith.cmpi ne, %1, %c0_i32_0 : i32
    scf.if %2 {
      %cst_32 = arith.constant 0xFF800000 : f32
      %63 = vector.broadcast %cst_32 : f32 to vector<2x256xf32>
      %c0_33 = arith.constant 0 : index
      %c0_34 = arith.constant 0 : index
      %64 = vector.load %arg15[%c0_33, %c0_34] : memref<2x256xf32, #tpu.memory_space<vmem>>, vector<2x256xf32>
      tpu.vector_store %arg15[%c0_33, %c0_34], %63 {strides = array<i32>} : memref<2x256xf32, #tpu.memory_space<vmem>>, vector<2x256xf32>,
    } else {
    }
    %c8_i32 = arith.constant 8 : i32
    %3 = arith.muli %arg1, %c8_i32 : i32
    %4 = tpu.iota {dimensions = array<i32: 1>} : vector<2x8x1xi32>
    %5 = vector.broadcast %3 : i32 to vector<2x8x1xi32>
    %6 = arith.addi %5, %4 : vector<2x8x1xi32>
    %c0 = arith.constant 0 : index
    %c0_1 = arith.constant 0 : index
    %c0_2 = arith.constant 0 : index
    %7 = vector.load %arg4[%c0, %c0_1, %c0_2] : memref<2x1x1xi32, #tpu.memory_space<vmem>>, vector<2x1x1xi32>
    %8 = vector.broadcast %7 : vector<2x1x1xi32> to vector<2x8x1xi32>
    %9 = arith.cmpi slt, %6, %8 : vector<2x8x1xi32>
    %10 = vector.shape_cast %9 : vector<2x8x1xi1> to vector<16x1xi1>
    %c7_i32 = arith.constant 7 : i32
    %11 = vector.broadcast %c7_i32 : i32 to vector<2x8x1xi32>
    %12 = arith.cmpi slt, %6, %11 : vector<2x8x1xi32>
    %cst = arith.constant 0.000000e+00 : f32
    %cst_3 = arith.constant -1.000000e+30 : f32
    %13 = vector.broadcast %cst : f32 to vector<2x8x1xf32>
    %14 = vector.broadcast %cst_3 : f32 to vector<2x8x1xf32>
    %15 = arith.select %12, %13, %14 : vector<2x8x1xi1>, vector<2x8x1xf32>
    %c0_4 = arith.constant 0 : index
    %c0_5 = arith.constant 0 : index
    %c0_6 = arith.constant 0 : index
    %16 = vector.load %arg2[%c0_4, %c0_5, %c0_6] : memref<2x8x1xi32, #tpu.memory_space<vmem>>, vector<2x8x1xi32>
    %17 = vector.shape_cast %16 : vector<2x8x1xi32> to vector<16x1xi32>
    %c0_7 = arith.constant 0 : index
    %c0_8 = arith.constant 0 : index
    %c0_9 = arith.constant 0 : index
    %18 = vector.load %arg3[%c0_7, %c0_8, %c0_9] : memref<2x8x1xi32, #tpu.memory_space<vmem>>, vector<2x8x1xi32>
    %19 = vector.shape_cast %18 : vector<2x8x1xi32> to vector<16x1xi32>
    %20 = tpu.iota {dimensions = array<i32: 1>} : vector<16x48xi32>
    %21 = vector.broadcast %17 : vector<16x1xi32> to vector<16x48xi32>
    %22 = arith.cmpi eq, %21, %20 : vector<16x48xi32>
    %23 = vector.broadcast %19 : vector<16x1xi32> to vector<16x48xi32>
    %24 = arith.cmpi eq, %23, %20 : vector<16x48xi32>
    %25 = arith.ori %22, %24 : vector<16x48xi1>
    %26 = vector.broadcast %10 : vector<16x1xi1> to vector<16x48xi1>
    %27 = arith.andi %25, %26 : vector<16x48xi1>
    %28 = arith.extui %27 : vector<16x48xi1> to vector<16x48xi32>
    %29 = arith.sitofp %28 : vector<16x48xi32> to vector<16x48xf32>
    %30 = arith.truncf %29 : vector<16x48xf32> to vector<16x48xbf16>
    %c0_10 = arith.constant 0 : index
    %c0_11 = arith.constant 0 : index
    %31 = vector.load %arg5[%c0_10, %c0_11] : memref<48x1024xbf16, #tpu.memory_space<vmem>>, vector<48x1024xbf16>
    %cst_12 = arith.constant dense<0.000000e+00> : vector<16x1024xf32>
    %32 = tpu.matmul %30, %31, %cst_12 {dimension_numbers = #tpu.dot_dimension_numbers<[1], [0], [0], [1], [0, 0, 1, 1], [], []>} : vector<16x48xbf16>, vector<48x1024xbf16>, vector<16x1024xf32> -> vector<16x1024xf32>
    %33 = vector.extract_strided_slice %32 {offsets = [0, 0], sizes = [16, 512], strides = [1, 1]} : vector<16x1024xf32> to vector<16x512xf32>
    %34 = vector.extract_strided_slice %32 {offsets = [0, 512], sizes = [16, 512], strides = [1, 1]} : vector<16x1024xf32> to vector<16x512xf32>
    %35 = arith.mulf %33, %34 : vector<16x512xf32>
    %36 = arith.truncf %35 : vector<16x512xf32> to vector<16x512xbf16>
    %c0_13 = arith.constant 0 : index
    %c0_14 = arith.constant 0 : index
    %37 = vector.load %arg6[%c0_13, %c0_14] : memref<512x256xbf16, #tpu.memory_space<vmem>>, vector<512x256xbf16>
    %cst_15 = arith.constant dense<0.000000e+00> : vector<16x256xf32>
    %38 = tpu.matmul %36, %37, %cst_15 {dimension_numbers = #tpu.dot_dimension_numbers<[1], [0], [0], [1], [0, 0, 1, 1], [], []>} : vector<16x512xbf16>, vector<512x256xbf16>, vector<16x256xf32> -> vector<16x256xf32>
    %c0_16 = arith.constant 0 : index
    %c0_17 = arith.constant 0 : index
    %39 = vector.load %arg7[%c0_16, %c0_17] : memref<1x256xf32, #tpu.memory_space<vmem>>, vector<1x256xf32>
    %40 = vector.broadcast %39 : vector<1x256xf32> to vector<16x256xf32>
    %41 = arith.addf %38, %40 : vector<16x256xf32>
    %cst_18 = arith.constant 0.000000e+00 : f32
    %42 = vector.broadcast %cst_18 : f32 to vector<16x256xf32>
    %43 = arith.cmpf ogt, %41, %42 : vector<16x256xf32>
    %cst_19 = arith.constant 0.00999999977 : f32
    %44 = vector.broadcast %cst_19 : f32 to vector<16x256xf32>
    %45 = arith.mulf %44, %41 : vector<16x256xf32>
    %46 = arith.select %43, %41, %45 : vector<16x256xi1>, vector<16x256xf32>
    %47 = arith.truncf %46 : vector<16x256xf32> to vector<16x256xbf16>
    %c0_20 = arith.constant 0 : index
    %c0_21 = arith.constant 0 : index
    %48 = vector.load %arg8[%c0_20, %c0_21] : memref<256x256xbf16, #tpu.memory_space<vmem>>, vector<256x256xbf16>
    %cst_22 = arith.constant dense<0.000000e+00> : vector<16x256xf32>
    %49 = tpu.matmul %47, %48, %cst_22 {dimension_numbers = #tpu.dot_dimension_numbers<[1], [0], [0], [1], [0, 0, 1, 1], [], []>} : vector<16x256xbf16>, vector<256x256xbf16>, vector<16x256xf32> -> vector<16x256xf32>
    %c0_23 = arith.constant 0 : index
    %c0_24 = arith.constant 0 : index
    %50 = vector.load %arg9[%c0_23, %c0_24] : memref<1x256xf32, #tpu.memory_space<vmem>>, vector<1x256xf32>
    %51 = vector.broadcast %50 : vector<1x256xf32> to vector<16x256xf32>
    %52 = arith.addf %49, %51 : vector<16x256xf32>
    %53 = vector.shape_cast %52 : vector<16x256xf32> to vector<2x8x256xf32>
    %54 = vector.broadcast %15 : vector<2x8x1xf32> to vector<2x8x256xf32>
    %55 = arith.addf %53, %54 : vector<2x8x256xf32>
    %c0_25 = arith.constant 0 : index
    %c0_26 = arith.constant 0 : index
    %56 = vector.load %arg15[%c0_25, %c0_26] : memref<2x256xf32, #tpu.memory_space<vmem>>, vector<2x256xf32>
    %cst_27 = arith.constant dense<0xFF800000> : vector<2x256xf32>
    %57 = vector.multi_reduction <maximumf>, %55, %cst_27 [1] : vector<2x8x256xf32> to vector<2x256xf32>
    %58 = arith.maximumf %56, %57 : vector<2x256xf32>
    %c0_28 = arith.constant 0 : index
    %c0_29 = arith.constant 0 : index
    %59 = vector.load %arg15[%c0_28, %c0_29] : memref<2x256xf32, #tpu.memory_space<vmem>>, vector<2x256xf32>
    tpu.vector_store %arg15[%c0_28, %c0_29], %58 {strides = array<i32>} : memref<2x256xf32, #tpu.memory_space<vmem>>, vector<2x256xf32>,
    %c0_i32_30 = arith.constant 0 : i32
    %60 = arith.cmpi eq, %arg1, %c0_i32_30 : i32
    %61 = arith.extui %60 : i1 to i32
    %c0_i32_31 = arith.constant 0 : i32
    %62 = arith.cmpi ne, %61, %c0_i32_31 : i32
    scf.if %62 {
      %c0_32 = arith.constant 0 : index
      %c0_33 = arith.constant 0 : index
      %63 = vector.load %arg15[%c0_32, %c0_33] : memref<2x256xf32, #tpu.memory_space<vmem>>, vector<2x256xf32>
      %64 = arith.truncf %63 : vector<2x256xf32> to vector<2x256xbf16>
      %c0_34 = arith.constant 0 : index
      %c0_35 = arith.constant 0 : index
      %65 = vector.load %arg10[%c0_34, %c0_35] : memref<256x256xbf16, #tpu.memory_space<vmem>>, vector<256x256xbf16>
      %cst_36 = arith.constant dense<0.000000e+00> : vector<2x256xf32>
      %66 = tpu.matmul %64, %65, %cst_36 {dimension_numbers = #tpu.dot_dimension_numbers<[1], [0], [0], [1], [0, 0, 1, 1], [], []>} : vector<2x256xbf16>, vector<256x256xbf16>, vector<2x256xf32> -> vector<2x256xf32>
      %c0_37 = arith.constant 0 : index
      %c0_38 = arith.constant 0 : index
      %67 = vector.load %arg11[%c0_37, %c0_38] : memref<1x256xf32, #tpu.memory_space<vmem>>, vector<1x256xf32>
      %68 = vector.broadcast %67 : vector<1x256xf32> to vector<2x256xf32>
      %69 = arith.addf %66, %68 : vector<2x256xf32>
      %cst_39 = arith.constant 0.000000e+00 : f32
      %70 = vector.broadcast %cst_39 : f32 to vector<2x256xf32>
      %71 = arith.cmpf ogt, %69, %70 : vector<2x256xf32>
      %cst_40 = arith.constant 0.00999999977 : f32
      %72 = vector.broadcast %cst_40 : f32 to vector<2x256xf32>
      %73 = arith.mulf %72, %69 : vector<2x256xf32>
      %74 = arith.select %71, %69, %73 : vector<2x256xi1>, vector<2x256xf32>
      %75 = arith.truncf %74 : vector<2x256xf32> to vector<2x256xbf16>
      %c0_41 = arith.constant 0 : index
      %c0_42 = arith.constant 0 : index
      %76 = vector.load %arg12[%c0_41, %c0_42] : memref<256x128xbf16, #tpu.memory_space<vmem>>, vector<256x128xbf16>
      %cst_43 = arith.constant dense<0.000000e+00> : vector<2x128xf32>
      %77 = tpu.matmul %75, %76, %cst_43 {dimension_numbers = #tpu.dot_dimension_numbers<[1], [0], [0], [1], [0, 0, 1, 1], [], []>} : vector<2x256xbf16>, vector<256x128xbf16>, vector<2x128xf32> -> vector<2x128xf32>
      %c0_44 = arith.constant 0 : index
      %c0_45 = arith.constant 0 : index
      %78 = vector.load %arg13[%c0_44, %c0_45] : memref<1x128xf32, #tpu.memory_space<vmem>>, vector<1x128xf32>
      %79 = vector.broadcast %78 : vector<1x128xf32> to vector<2x128xf32>
      %80 = arith.addf %77, %79 : vector<2x128xf32>
      %c0_46 = arith.constant 0 : index
      %c0_47 = arith.constant 0 : index
      %81 = vector.load %arg14[%c0_46, %c0_47] : memref<2x128xf32, #tpu.memory_space<vmem>>, vector<2x128xf32>
      tpu.vector_store %arg14[%c0_46, %c0_47], %80 {strides = array<i32>} : memref<2x128xf32, #tpu.memory_space<vmem>>, vector<2x128xf32>,
    } else {
    }
    return
  }
  func.func @transform_0(%arg0: i32, %arg1: i32) -> (i32, i32, i32) {
    %c0_i32 = arith.constant 0 : i32
    %c0_i32_0 = arith.constant 0 : i32
    return %arg0, %arg1, %c0_i32 : i32, i32, i32
  }
  func.func @transform_1(%arg0: i32, %arg1: i32) -> (i32, i32, i32) {
    %c0_i32 = arith.constant 0 : i32
    %c0_i32_0 = arith.constant 0 : i32
    return %arg0, %arg1, %c0_i32 : i32, i32, i32
  }
  func.func @transform_2(%arg0: i32, %arg1: i32) -> (i32, i32, i32) {
    %c0_i32 = arith.constant 0 : i32
    %c0_i32_0 = arith.constant 0 : i32
    %c0_i32_1 = arith.constant 0 : i32
    return %arg0, %c0_i32, %c0_i32_0 : i32, i32, i32
  }
  func.func @transform_3(%arg0: i32, %arg1: i32) -> (i32, i32) {
    %c0_i32 = arith.constant 0 : i32
    %c0_i32_0 = arith.constant 0 : i32
    %c0_i32_1 = arith.constant 0 : i32
    return %c0_i32, %c0_i32_0 : i32, i32
  }
  func.func @transform_4(%arg0: i32, %arg1: i32) -> (i32, i32) {
    %c0_i32 = arith.constant 0 : i32
    %c0_i32_0 = arith.constant 0 : i32
    %c0_i32_1 = arith.constant 0 : i32
    return %c0_i32, %c0_i32_0 : i32, i32
  }
  func.func @transform_5(%arg0: i32, %arg1: i32) -> (i32, i32) {
    %c0_i32 = arith.constant 0 : i32
    %c0_i32_0 = arith.constant 0 : i32
    %c0_i32_1 = arith.constant 0 : i32
    return %c0_i32, %c0_i32_0 : i32, i32
  }
  func.func @transform_6(%arg0: i32, %arg1: i32) -> (i32, i32) {
    %c0_i32 = arith.constant 0 : i32
    %c0_i32_0 = arith.constant 0 : i32
    %c0_i32_1 = arith.constant 0 : i32
    return %c0_i32, %c0_i32_0 : i32, i32
  }
  func.func @transform_7(%arg0: i32, %arg1: i32) -> (i32, i32) {
    %c0_i32 = arith.constant 0 : i32
    %c0_i32_0 = arith.constant 0 : i32
    %c0_i32_1 = arith.constant 0 : i32
    return %c0_i32, %c0_i32_0 : i32, i32
  }
  func.func @transform_8(%arg0: i32, %arg1: i32) -> (i32, i32) {
    %c0_i32 = arith.constant 0 : i32
    %c0_i32_0 = arith.constant 0 : i32
    %c0_i32_1 = arith.constant 0 : i32
    return %c0_i32, %c0_i32_0 : i32, i32
  }
  func.func @transform_9(%arg0: i32, %arg1: i32) -> (i32, i32) {
    %c0_i32 = arith.constant 0 : i32
    %c0_i32_0 = arith.constant 0 : i32
    %c0_i32_1 = arith.constant 0 : i32
    return %c0_i32, %c0_i32_0 : i32, i32
  }
  func.func @transform_10(%arg0: i32, %arg1: i32) -> (i32, i32) {
    %c0_i32 = arith.constant 0 : i32
    %c0_i32_0 = arith.constant 0 : i32
    %c0_i32_1 = arith.constant 0 : i32
    return %c0_i32, %c0_i32_0 : i32, i32
  }
  func.func @transform_11(%arg0: i32, %arg1: i32) -> (i32, i32) {
    %c0_i32 = arith.constant 0 : i32
    %c0_i32_0 = arith.constant 0 : i32
    %c0_i32_1 = arith.constant 0 : i32
    return %c0_i32, %c0_i32_0 : i32, i32
  }
  func.func @transform_12(%arg0: i32, %arg1: i32) -> (i32, i32) {
    %c0_i32 = arith.constant 0 : i32
    %c0_i32_0 = arith.constant 0 : i32
    return %arg0, %c0_i32 : i32, i32
  }
}

</mosaic_0001>

<bundles_post_ra>
// kernel: tpu_custom_call.1
= control target key start
LH: loop header
LB: loop body
LE: loop exit
PB: predicated region body
PF: predicated region fallthrough
CT: control target
= control target key end

     0   :  { %17 = vsyncpa [#allocation4], 0  ;;  %s2515_s0 = inlined_call_operand.vmem [shape: s32[2,8,1], index: 0, kind: input, shape index: {}]   ;;  %s2516_s1 = inlined_call_operand.vmem [shape: s32[2,8,1], index: 1, kind: input, shape index: {}]   ;;  %s2517_s2 = inlined_call_operand.vmem [shape: s32[2,1,1], index: 2, kind: input, shape index: {}]   ;;  %s2518_s3 = inlined_call_operand.hbm [shape: bf16[48,1024], index: 3, kind: input, shape index: {}]   ;;  %s2519_s4 = inlined_call_operand.hbm [shape: bf16[512,256], index: 4, kind: input, shape index: {}]   ;;  %s2520_s5 = inlined_call_operand.vmem [shape: f32[1,256], index: 5, kind: input, shape index: {}]   ;;  %s2521_s6 = inlined_call_operand.hbm [shape: bf16[256,256], index: 6, kind: input, shape index: {}]   ;;  %s2522_s7 = inlined_call_operand.vmem [shape: f32[1,256], index: 7, kind: input, shape index: {}]   ;;  %s2523_s8 = inlined_call_operand.hbm [shape: bf16[256,256], index: 8, kind: input, shape index: {}]   ;;  %s2524_s9 = inlined_call_operand.vmem [shape: f32[1,256], index: 9, kind: input, shape index: {}]   ;;  %s2525_s10 = inlined_call_operand.hbm [shape: bf16[256,128], index: 10, kind: input, shape index: {}]   ;;  %s2526_s11 = inlined_call_operand.vmem [shape: f32[1,128], index: 11, kind: input, shape index: {}]   ;;  %s2527_s12 = inlined_call_operand.hbm [shape: f32[2,128], index: 12, kind: output, shape index: {}]  }
   0x1   :  { %18 = vsyncpa [#allocation7], 0 }
   0x2   :  { %19 = vsyncpa [#allocation10], 0 }
   0x3   :  { %20 = vsyncpa [#allocation5], 0  ;;  %s2334_s21 = smov [#allocation6]  }
   0x4   :  { %s44_s22 = sshll.u32 %s2334_s21, 4  ;;  %s45_s22 = int_to_ptr.vmem [resolvable:$true] %s44_s22 }
   0x5   :  { %s2214_s23 = scalar_lea.vmem %s45_s22, 8192  ;;  %p2219_p1 = scmp.lt.s32.totalorder %s45_s22, %s45_s22 }
   0x6   :  { %p2215_p0 = scmp.ne.s32.totalorder %s45_s22, %s2214_s23  ;;  %p2220_p2 = scmp.lt.s32.totalorder %s2214_s23, %s2214_s23 }
   0x8   :  { %p2221_p3 = por %p2220_p2, %p2219_p1 }
   0xa   :  { %p2222_p4 = pnand %p2221_p3, %p2215_p0 }
   0xc   :  { %2225 = shalt.err (!%p2222_p4)
}
   0xd   :  { %s2335_s24 = smov 128   ;;  %s2336_s25 = smov 8  }
   0xe   :  { %50 = dma.hbm_to_vmem [thread:$0]  %s2519_s4, 8192, %s45_s22, [#allocation7], %s2335_s24, %s2335_s24, %s2336_s25  }
   0xf   :  { %s2337_s28 = smov [#allocation9]   ;;  %s2338_s30 = smov [#allocation3]  }
  0x10   :  { %s72_s29 = sshll.u32 %s2337_s28, 4  ;;  %s32_s13 = sshll.u32 %s2338_s30, 4  ;;  %s73_s29 = int_to_ptr.vmem [resolvable:$true] %s72_s29  ;;  %s33_s13 = int_to_ptr.vmem [resolvable:$true] %s32_s13 }
  0x11   :  { %s2234_s14 = scalar_lea.vmem %s73_s29, 4096  ;;  %p2239_p6 = scmp.lt.s32.totalorder %s73_s29, %s73_s29 }
  0x12   :  { %p2235_p5 = scmp.ne.s32.totalorder %s73_s29, %s2234_s14  ;;  %p2240_p7 = scmp.lt.s32.totalorder %s2234_s14, %s2234_s14 }
  0x14   :  { %p2241_p8 = por %p2240_p7, %p2239_p6 }
  0x16   :  { %p2242_p9 = pnand %p2241_p8, %p2235_p5 }
  0x18   :  { %2245 = shalt.err (!%p2242_p9)
}
  0x19   :  { %78 = dma.hbm_to_vmem [thread:$0]  %s2523_s8, 4096, %s73_s29, [#allocation10], %s2335_s24, %s2335_s24, %s2336_s25  }
  0x1a   :  { %s2254_s4 = scalar_lea.vmem %s33_s13, 3072  ;;  %p2259_p11 = scmp.lt.s32.totalorder %s33_s13, %s33_s13 }
  0x1b   :  { %p2255_p10 = scmp.ne.s32.totalorder %s33_s13, %s2254_s4  ;;  %p2260_p12 = scmp.lt.s32.totalorder %s2254_s4, %s2254_s4 }
  0x1d   :  { %p2261_p13 = por %p2260_p12, %p2259_p11 }
  0x1f   :  { %p2262_p0 = pnand %p2261_p13, %p2255_p10 }
  0x21   :  { %2265 = shalt.err (!%p2262_p0)
}
  0x22   :  { %s2339_s17 = smov 512   ;;  %s2340_s18 = smov 32  }
  0x23   :  { %38 = dma.hbm_to_vmem [thread:$0]  %s2518_s3, 3072, %s33_s13, [#allocation4], %s2339_s17, %s2339_s17, %s2340_s18  }
  0x24   :  { %s2341_s21 = smov [#allocation8]   ;;  %s2342_s23 = smov [#allocation11]  }
  0x25   :  { %s58_s22 = sshll.u32 %s2341_s21, 4  ;;  %s86_s26 = sshll.u32 %s2342_s23, 4  ;;  %s59_s22 = int_to_ptr.vmem [resolvable:$true] %s58_s22  ;;  %s87_s26 = int_to_ptr.vmem [resolvable:$true] %s86_s26 }
  0x26   :  { %s2274_s8 = scalar_lea.vmem %s59_s22, 4096  ;;  %p2279_p2 = scmp.lt.s32.totalorder %s59_s22, %s59_s22 }
  0x27   :  { %p2275_p1 = scmp.ne.s32.totalorder %s59_s22, %s2274_s8  ;;  %p2280_p3 = scmp.lt.s32.totalorder %s2274_s8, %s2274_s8 }
  0x29   :  { %p2281_p4 = por %p2280_p3, %p2279_p2 }
  0x2b   :  { %p2282_p5 = pnand %p2281_p4, %p2275_p1 }
  0x2d   :  { %2285 = shalt.err (!%p2282_p5)
}
  0x2e   :  { %64 = dma.hbm_to_vmem [thread:$0]  %s2521_s6, 4096, %s59_s22, [#allocation7], %s2335_s24, %s2335_s24, %s2336_s25  }
  0x2f   :  { %s2294_s3 = scalar_lea.vmem %s87_s26, 2048  ;;  %p2299_p7 = scmp.lt.s32.totalorder %s87_s26, %s87_s26 }
  0x30   :  { %p2295_p6 = scmp.ne.s32.totalorder %s87_s26, %s2294_s3  ;;  %p2300_p8 = scmp.lt.s32.totalorder %s2294_s3, %s2294_s3 }
  0x32   :  { %p2301_p9 = por %p2300_p8, %p2299_p7 }
  0x34   :  { %p2302_p10 = pnand %p2301_p9, %p2295_p6 }
  0x36   :  { %2305 = shalt.err (!%p2302_p10)
}
  0x37   :  { %s2343_s29 = smov 64   ;;  %s2344_s30 = smov 4  }
  0x38   :  { %92 = dma.hbm_to_vmem [thread:$0]  %s2525_s10, 2048, %s87_s26, [#allocation10], %s2343_s29, %s2343_s29, %s2344_s30  }
  0x39   :  { %2326 = dma.done.wait [#allocation4], 3072  }
  0x3a   :  { %2327 = vsyncadd [#allocation4], 4294964224 }
  0x3b   :  { %2328 = dma.done.wait [#allocation7], 12288  }
  0x3c   :  { %2329 = vsyncadd [#allocation7], 4294955008 }
  0x3d   :  { %2330 = dma.done.wait [#allocation10], 6144  }
  0x3e   :  { %2331 = vsyncadd [#allocation10], 4294961152  ;;  %v2345_v0 = vmov 0   ;;  %v117_v1 = vlaneseq  ;;  %v137_v3 = vld [vmem:[%s2516_s1] sm:$0xff]  ;;  %v138_v5 = vld [vmem:[%s2516_s1 + $0x8] sm:$0xff]  ;;  %v2346_v49 = vmov 0.0  }
  0x3f   :  { %1997 = vset.pattern.permute.xlu1 %v2345_v0  ;;  %1996 = vset.pattern.permute.xlu0 %v2345_v0  ;;  %v135_v4 = vld [vmem:[%s2515_s0] sm:$0xff]  ;;  %v136_v6 = vld [vmem:[%s2515_s0 + $0x8] sm:$0xff]  ;;  %v194_v11 = vld [vmem:[#allocation3 + $0x90] sm:$0xff]  ;;  %vm320_vm12 = vcmask 392192   ;;  %s2350_s26 = smov [#allocation12]  }
  0x40   :  { %356 = vmatprep.mubr.bf16.mxu1 %v2345_v0  ;;  %442 = vmatprep.mubr.bf16.mxu0 %v2345_v0  ;;  %v2445_v2 = vshrl.u32 %v117_v1, 7  ;;  %v1780_v7 = vld [vmem:[%s2517_s2 + $0x1] ss:$0 sm:$0xff]  ;;  %v1779_v8 = vld [vmem:[%s2517_s2] ss:$0 sm:$0xff]  ;;  %v192_v9 = vld [vmem:[#allocation3 + $0x80] sm:$0xff] }
  0x41   :  { %150 = vperm.xlu1 %1997, %v137_v3   ;;  %142 = vperm.xlu0 %1996, %v135_v4   ;;  %v196_v10 = vld [vmem:[#allocation3 + $0xa0] sm:$0xff]  ;;  %v198_v14 = vld [vmem:[#allocation3 + $0xb0] sm:$0xff]  ;;  %v193_v31 = vld [vmem:[#allocation3 + $0x88] sm:$0xff]  ;;  %v140_v42 = vand.u32 127, %v117_v1  ;;  %s1768_s8 = sshll.u32 %s2350_s26, 4  ;;  %s1769_s8 = int_to_ptr.vmem [resolvable:$true] %s1768_s8 }
  0x42   :  { %vm132_vm0 = vcmp.lt.s32.totalorder %v2445_v2, %v1780_v7  ;;  %vm131_vm1 = vcmp.lt.s32.totalorder %v2445_v2, %v1779_v8  ;;  %v1800_v12 = vcombine.high %v192_v9, %v196_v10  ;;  %v1799_v13 = vcombine.low %v192_v9, %v196_v10  ;;  %v184_v15 = vld [vmem:[#allocation3 + $0x40] sm:$0xff]  ;;  %v186_v20 = vld [vmem:[#allocation3 + $0x50] sm:$0xff]  ;;  %v197_v32 = vld [vmem:[#allocation3 + $0xa8] sm:$0xff]  ;;  %s2306_s27 = scalar_lea.vmem %s1769_s8, 32  ;;  %p2311_p12 = scmp.lt.s32.totalorder %s1769_s8, %s1769_s8 }
  0x43   :  { %v188_v16 = vld [vmem:[#allocation3 + $0x60] sm:$0xff]  ;;  %v1804_v17 = vcombine.high %v194_v11, %v198_v14  ;;  %v1803_v18 = vcombine.low %v194_v11, %v198_v14  ;;  %v190_v21 = vld [vmem:[#allocation3 + $0x70] sm:$0xff]  ;;  %v160_v27 = vsel %vm132_vm0, 1, %v2345_v0  ;;  %v159_v28 = vsel %vm131_vm1, 1, %v2345_v0  ;;  %v185_v47 = vld [vmem:[#allocation3 + $0x48] sm:$0xff]  ;;  %p2307_p11 = scmp.ne.s32.totalorder %s1769_s8, %s2306_s27  ;;  %p2312_p13 = scmp.lt.s32.totalorder %s2306_s27, %s2306_s27 }
  0x44   :  { %v1792_v19 = vcombine.high %v184_v15, %v188_v16  ;;  %v176_v22 = vld [vmem:[#allocation3] sm:$0xff]  ;;  %v1796_v23 = vcombine.high %v186_v20, %v190_v21  ;;  %v178_v25 = vld [vmem:[#allocation3 + $0x10] sm:$0xff]  ;;  %334 = vmatprep.subr.bf16.mxu1 %v1800_v12  ;;  %v1791_v29 = vcombine.low %v184_v15, %v188_v16  ;;  %v1795_v30 = vcombine.low %v186_v20, %v190_v21  ;;  %v189_v48 = vld [vmem:[#allocation3 + $0x68] sm:$0xff] }
  0x45   :  { %153 = vperm.xlu1 %1997, %v138_v5   ;;  %145 = vperm.xlu0 %1996, %v136_v6   ;;  %v180_v24 = vld [vmem:[#allocation3 + $0x20] sm:$0xff]  ;;  %v182_v26 = vld [vmem:[#allocation3 + $0x30] sm:$0xff]  ;;  %v1801_v35 = vcombine.low %v193_v31, %v197_v32  ;;  %v1802_v38 = vcombine.high %v193_v31, %v197_v32  ;;  %v1794_v53 = vcombine.high %v185_v47, %v189_v48  ;;  %v177_v55 = vld [vmem:[#allocation3 + $0x8] sm:$0xff]  ;;  %vm133_vm1 = vcmp.lt.s32.totalorder %v2445_v2, 7  ;;  %p2313_p0 = por %p2312_p13, %p2311_p12 }
  0x46   :  { %420 = vmatprep.subr.bf16.mxu0 %v1804_v17  ;;  %335 = vmatpush1.bf16.msra.mxu1 %v1799_v13  ;;  %v1784_v33 = vcombine.high %v176_v22, %v180_v24  ;;  %v1788_v34 = vcombine.high %v178_v25, %v182_v26  ;;  %v1783_v36 = vcombine.low %v176_v22, %v180_v24  ;;  %v2000_v39 = vld [vmem:[#allocation6 + $0x74] ss:$8 sps:$4 sm:$0xff]   ;;  %v1998_v54 = vld [vmem:[#allocation6 + $0x70] ss:$8 sps:$4 sm:$0xff]   ;;  %v181_v56 = vld [vmem:[#allocation3 + $0x28] sm:$0xff] }
  0x47   :  { %421 = vmatpush1.bf16.msra.mxu0 %v1803_v18  ;;  %336 = vmatprep.subr.bf16.mxu1 %v1792_v19  ;;  %v1787_v37 = vcombine.low %v178_v25, %v182_v26  ;;  %v2003_v57 = vld [vmem:[#allocation6 + $0x64] ss:$8 sps:$4 sm:$0xff]   ;;  %v1793_v58 = vcombine.low %v185_v47, %v189_v48  ;;  %v1786_v59 = vcombine.high %v177_v55, %v181_v56  ;;  %v2001_v60 = vld [vmem:[#allocation6 + $0x60] ss:$8 sps:$4 sm:$0xff]   ;;  %v195_v61 = vld [vmem:[#allocation3 + $0x98] sm:$0xff]  ;;  %p2314_p1 = pnand %p2313_p0, %p2307_p11 }
  0x48   :  { %422 = vmatprep.subr.bf16.mxu0 %v1796_v23  ;;  %v199_v62 = vld [vmem:[#allocation3 + $0xb8] sm:$0xff]  ;;  %v1785_v1 = vcombine.low %v177_v55, %v181_v56  ;;  %v2009_v7 = vld [vmem:[#allocation6 + $0x44] ss:$8 sps:$4 sm:$0xff]   ;;  %v2007_v10 = vld [vmem:[#allocation6 + $0x40] ss:$8 sps:$4 sm:$0xff]  }
  0x49   :  { %165 = vperm.xlu1 %1997, %v160_v27   ;;  %162 = vperm.xlu0 %1996, %v159_v28   ;;  %v2006_v63 = vld [vmem:[#allocation6 + $0x54] ss:$8 sps:$4 sm:$0xff]   ;;  %v1806_v3 = vcombine.high %v195_v61, %v199_v62  ;;  %v2004_v4 = vld [vmem:[#allocation6 + $0x50] ss:$8 sps:$4 sm:$0xff]   ;;  %v1805_v8 = vcombine.low %v195_v61, %v199_v62  ;;  %v2015_v17 = vld [vmem:[#allocation6 + $0x24] ss:$8 sps:$4 sm:$0xff]  }
  0x4a   :  { %337 = vmatpush1.bf16.msra.mxu1 %v1791_v29  ;;  %v187_v5 = vld [vmem:[#allocation3 + $0x58] sm:$0xff]  ;;  %v2013_v19 = vld [vmem:[#allocation6 + $0x20] ss:$8 sps:$4 sm:$0xff]   ;;  %v2027_v24 = vld [vmem:[#allocation6 + $0x4] ss:$8 sps:$4 sm:$0xff]  }
  0x4b   :  { %423 = vmatpush1.bf16.msra.mxu0 %v1795_v30  ;;  %338 = vmatprep.subr.bf16.mxu1 %v1784_v33  ;;  %v191_v6 = vld [vmem:[#allocation3 + $0x78] sm:$0xff]  ;;  %v2022_v25 = vld [vmem:[#allocation6 + $0x160] ss:$8 sps:$4 sm:$0xff]   ;;  %v2036_v31 = vld [vmem:[#allocation6 + $0x144] ss:$8 sps:$4 sm:$0xff]  }
  0x4c   :  { %424 = vmatprep.subr.bf16.mxu0 %v1788_v34  ;;  %v1798_v9 = vcombine.high %v187_v5, %v191_v6  ;;  %v179_v11 = vld [vmem:[#allocation3 + $0x18] sm:$0xff]  ;;  %v1797_v14 = vcombine.low %v187_v5, %v191_v6  ;;  %v2025_v26 = vld [vmem:[#allocation6] ss:$8 sps:$4 sm:$0xff]   ;;  %v2039_v32 = vld [vmem:[#allocation6 + $0xe4] ss:$8 sps:$4 sm:$0xff]  }
  0x4d   :  { %v183_v12 = vld [vmem:[#allocation3 + $0x38] sm:$0xff]  ;;  %v2034_v33 = vld [vmem:[#allocation6 + $0x140] ss:$8 sps:$4 sm:$0xff]   ;;  %v2060_v47 = vld [vmem:[#allocation6 + $0x104] ss:$8 sps:$4 sm:$0xff]  }
  0x4e   :  { %339 = vmatpush1.bf16.msra.mxu1 %v1783_v36  ;;  %v2012_v13 = vld [vmem:[#allocation6 + $0x34] ss:$8 sps:$4 sm:$0xff]   ;;  %v1790_v15 = vcombine.high %v179_v11, %v183_v12  ;;  %v2010_v16 = vld [vmem:[#allocation6 + $0x30] ss:$8 sps:$4 sm:$0xff]   ;;  %v1789_v18 = vcombine.low %v179_v11, %v183_v12  ;;  %v2037_v34 = vld [vmem:[#allocation6 + $0xe0] ss:$8 sps:$4 sm:$0xff]  }
  0x4f   :  { %425 = vmatpush1.bf16.msra.mxu0 %v1787_v37  ;;  %377 = vmatprep.subr.bf16.mxu1 %v1802_v38  ;;  %v2018_v20 = vld [vmem:[#allocation6 + $0x174] ss:$8 sps:$4 sm:$0xff]   ;;  %v2016_v22 = vld [vmem:[#allocation6 + $0x170] ss:$8 sps:$4 sm:$0xff]   ;;  %v2058_v48 = vld [vmem:[#allocation6 + $0x100] ss:$8 sps:$4 sm:$0xff]  }
  0x50   :  { %904 = vmatprep.subr.bf16.mxu0 %v2000_v39  ;;  %v2021_v21 = vld [vmem:[#allocation6 + $0x14] ss:$8 sps:$4 sm:$0xff]   ;;  %v2019_v23 = vld [vmem:[#allocation6 + $0x10] ss:$8 sps:$4 sm:$0xff]   ;;  %v2048_v39 = vld [vmem:[#allocation6 + $0x124] ss:$8 sps:$4 sm:$0xff]  }
  0x51   :  { %v2030_v27 = vld [vmem:[#allocation6 + $0x154] ss:$8 sps:$4 sm:$0xff]   ;;  %v2028_v29 = vld [vmem:[#allocation6 + $0x150] ss:$8 sps:$4 sm:$0xff]   ;;  %v2072_v55 = vld [vmem:[#allocation6 + $0x1e4] ss:$8 sps:$4 sm:$0xff]  }
  0x52   :  { %v2033_v28 = vld [vmem:[#allocation6 + $0xf4] ss:$8 sps:$4 sm:$0xff]   ;;  %v2031_v30 = vld [vmem:[#allocation6 + $0xf0] ss:$8 sps:$4 sm:$0xff]   ;;  %v2070_v56 = vld [vmem:[#allocation6 + $0x1e0] ss:$8 sps:$4 sm:$0xff]  }
  0x53   :  { %v2045_v36 = vld [vmem:[#allocation6 + $0xd4] ss:$8 sps:$4 sm:$0xff]   ;;  %v2040_v37 = vld [vmem:[#allocation6 + $0x130] ss:$8 sps:$4 sm:$0xff]   ;;  %v2081_v61 = vld [vmem:[#allocation6 + $0x1c4] ss:$8 sps:$4 sm:$0xff]  }
  0x54   :  { %v2043_v38 = vld [vmem:[#allocation6 + $0xd0] ss:$8 sps:$4 sm:$0xff]   ;;  %v2079_v62 = vld [vmem:[#allocation6 + $0x1c0] ss:$8 sps:$4 sm:$0xff]   ;;  %v2090_v5 = vld [vmem:[#allocation6 + $0x194] ss:$8 sps:$4 sm:$0xff]  }
  0x55   :  { %v2088_v6 = vld [vmem:[#allocation6 + $0x190] ss:$8 sps:$4 sm:$0xff]  }
  0xbc   :  { %v151_v40 = vpop.permute.xlu1 %150  ;;  %v143_v41 = vpop.permute.xlu0 %142 }
  0xbd   :  { %vm155_vm2 = vcmp.eq.s32.totalorder %v151_v40, %v140_v42  ;;  %vm147_vm3 = vcmp.eq.s32.totalorder %v143_v41, %v140_v42  ;;  %v2051_v40 = vld [vmem:[#allocation6 + $0xc4] ss:$8 sps:$4 sm:$0xff]   ;;  %v2046_v41 = vld [vmem:[#allocation6 + $0x120] ss:$8 sps:$4 sm:$0xff]  }
  0xbe   :  { %vm157_vm6 = vmor %vm147_vm3, %vm155_vm2  ;;  %vm1305_vm2 = vcmask 1041409   ;;  %vm1307_vm3 = vcmask 1043459  }
  0xc0   :  { %v154_v43 = vpop.permute.xlu1 %153  ;;  %v146_v44 = vpop.permute.xlu0 %145 }
  0xc1   :  { %vm156_vm4 = vcmp.eq.s32.totalorder %v154_v43, %v140_v42  ;;  %vm148_vm5 = vcmp.eq.s32.totalorder %v146_v44, %v140_v42  ;;  %v2049_v42 = vld [vmem:[#allocation6 + $0xc0] ss:$8 sps:$4 sm:$0xff]   ;;  %v2054_v43 = vld [vmem:[#allocation6 + $0x114] ss:$8 sps:$4 sm:$0xff]  }
  0xc2   :  { %vm158_vm7 = vmor %vm148_vm5, %vm156_vm4  ;;  %v2057_v44 = vld [vmem:[#allocation6 + $0xb4] ss:$8 sps:$4 sm:$0xff]   ;;  %vm1309_vm4 = vcmask 1045509   ;;  %vm1311_vm5 = vcmask 1047559  }
  0xc4   :  { %v166_v45 = vpop.permute.xlu1 %165  ;;  %v163_v46 = vpop.permute.xlu0 %162 }
  0xc5   :  { %vm168_vm8 = vcmp.eq.s32.totalorder %v166_v45, 1  ;;  %vm167_vm9 = vcmp.eq.s32.totalorder %v163_v46, 1  ;;  %v2052_v45 = vld [vmem:[#allocation6 + $0x110] ss:$8 sps:$4 sm:$0xff]  }
  0xc6   :  { %vm170_vm10 = vmand %vm158_vm7, %vm168_vm8  ;;  %v2055_v46 = vld [vmem:[#allocation6 + $0xb0] ss:$8 sps:$4 sm:$0xff]  }
  0xc7   :  { %v1782_v50 = vsel %vm170_vm10, 1.0, %v2346_v49  ;;  %vm169_vm11 = vmand %vm157_vm6, %vm167_vm9 }
  0xc8   :  { %v1781_v51 = vsel %vm169_vm11, 1.0, %v2346_v49  ;;  %v2063_v49 = vld [vmem:[#allocation6 + $0xa4] ss:$8 sps:$4 sm:$0xff]  }
  0xc9   :  { %v2474_v52 = vpack.c.bf16 %v1782_v50, %v1781_v51  ;;  %v2061_v50 = vld [vmem:[#allocation6 + $0xa0] ss:$8 sps:$4 sm:$0xff]   ;;  %v2066_v51 = vld [vmem:[#allocation6 + $0x1f4] ss:$8 sps:$4 sm:$0xff]  }
  0xcb   :  { %1807 = vmatmul.mubr.msk.bf16.vlgmr.msra.gmra.mxu1 %vm320_vm12, %v2474_v52  ;;  %1809 = vmatmul.mubr.msk.bf16.vlgmr.msra.gmra.mxu0 %vm320_vm12, %v2474_v52 }
  0xcc   :  { %378 = vmatpush1.bf16.msra.mxu1 %v1801_v35  ;;  %399 = vmatprep.mubr.bf16.mxu1 %v2345_v0  ;;  %v2042_v35 = vld [vmem:[#allocation6 + $0x134] ss:$8 sps:$4 sm:$0xff]  }
  0xcd   :  { %379 = vmatprep.subr.bf16.mxu1 %v1794_v53  ;;  %905 = vmatpush1.bf16.msra.mxu0 %v1998_v54  ;;  %v2069_v53 = vld [vmem:[#allocation6 + $0x94] ss:$8 sps:$4 sm:$0xff]   ;;  %v2067_v54 = vld [vmem:[#allocation6 + $0x90] ss:$8 sps:$4 sm:$0xff]  }
  0xce   :  { %906 = vmatprep.subr.bf16.mxu0 %v2003_v57  ;;  %v2075_v57 = vld [vmem:[#allocation6 + $0x84] ss:$8 sps:$4 sm:$0xff]  }
  0xd0   :  { %380 = vmatpush1.bf16.msra.mxu1 %v1793_v58  ;;  %v2073_v58 = vld [vmem:[#allocation6 + $0x80] ss:$8 sps:$4 sm:$0xff]  }
  0xd1   :  { %381 = vmatprep.subr.bf16.mxu1 %v1786_v59  ;;  %907 = vmatpush1.bf16.msra.mxu0 %v2001_v60  ;;  %v2078_v59 = vld [vmem:[#allocation6 + $0x1d4] ss:$8 sps:$4 sm:$0xff]   ;;  %v2076_v60 = vld [vmem:[#allocation6 + $0x1d0] ss:$8 sps:$4 sm:$0xff]  }
  0xd2   :  { %908 = vmatprep.subr.bf16.mxu0 %v2006_v63  ;;  %v2082_v63 = vld [vmem:[#allocation6 + $0x1b0] ss:$8 sps:$4 sm:$0xff]  }
  0xd4   :  { %382 = vmatpush1.bf16.msra.mxu1 %v1785_v1  ;;  %v2084_v1 = vld [vmem:[#allocation6 + $0x1b4] ss:$8 sps:$4 sm:$0xff]  }
  0xd5   :  { %463 = vmatprep.subr.bf16.mxu1 %v1806_v3  ;;  %909 = vmatpush1.bf16.msra.mxu0 %v2004_v4  ;;  %v2087_v3 = vld [vmem:[#allocation6 + $0x1a4] ss:$8 sps:$4 sm:$0xff]   ;;  %v2085_v4 = vld [vmem:[#allocation6 + $0x1a0] ss:$8 sps:$4 sm:$0xff]  }
  0xd6   :  { %910 = vmatprep.subr.bf16.mxu0 %v2009_v7  ;;  %v2093_v7 = vld [vmem:[#allocation6 + $0x184] ss:$8 sps:$4 sm:$0xff]  }
  0xd7   :  { %1808 = vmatmul.mubr.msk.bf16.vlgmr.msra.gmra.mxu1 %vm320_vm12, %v2474_v52 }
  0xd8   :  { %464 = vmatpush1.bf16.msra.mxu1 %v1805_v8  ;;  %485 = vmatprep.mubr.bf16.mxu1 %v2345_v0  ;;  %v2024_v0 = vld [vmem:[#allocation6 + $0x164] ss:$8 sps:$4 sm:$0xff]   ;;  %v2091_v8 = vld [vmem:[#allocation6 + $0x180] ss:$8 sps:$4 sm:$0xff]  }
  0xd9   :  { %465 = vmatprep.subr.bf16.mxu1 %v1798_v9  ;;  %911 = vmatpush1.bf16.msra.mxu0 %v2007_v10  ;;  %v2096_v9 = vld [vmem:[#allocation8 + $0x74] ss:$8 sps:$4 sm:$0xff]  }
  0xda   :  { %912 = vmatprep.subr.bf16.mxu0 %v2012_v13 }
  0xdc   :  { %466 = vmatpush1.bf16.msra.mxu1 %v1797_v14 }
  0xdd   :  { %467 = vmatprep.subr.bf16.mxu1 %v1790_v15  ;;  %913 = vmatpush1.bf16.msra.mxu0 %v2010_v16 }
  0xde   :  { %914 = vmatprep.subr.bf16.mxu0 %v2015_v17 }
  0xe0   :  { %468 = vmatpush1.bf16.msra.mxu1 %v1789_v18 }
  0xe1   :  { %915 = vmatpush1.bf16.msra.mxu0 %v2013_v19  ;;  %947 = vmatprep.subr.bf16.mxu1 %v2018_v20 }
  0xe2   :  { %916 = vmatprep.subr.bf16.mxu0 %v2021_v21 }
  0xe3   :  { %1810 = vmatmul.mubr.msk.bf16.vlgmr.msra.gmra.mxu1 %vm320_vm12, %v2474_v52  ;;  %v2064_v52 = vld [vmem:[#allocation6 + $0x1f0] ss:$8 sps:$4 sm:$0xff]  }
  0xe4   :  { %948 = vmatpush1.bf16.msra.mxu1 %v2016_v22 }
  0xe5   :  { %917 = vmatpush1.bf16.msra.mxu0 %v2019_v23  ;;  %949 = vmatprep.subr.bf16.mxu1 %v2024_v0  ;;  %v2094_v23 = vld [vmem:[#allocation8 + $0x70] ss:$8 sps:$4 sm:$0xff]  }
  0xe6   :  { %918 = vmatprep.subr.bf16.mxu0 %v2027_v24  ;;  %v2099_v24 = vld [vmem:[#allocation8 + $0x64] ss:$8 sps:$4 sm:$0xff]  }
  0xe8   :  { %950 = vmatpush1.bf16.msra.mxu1 %v2022_v25 }
  0xe9   :  { %919 = vmatpush1.bf16.msra.mxu0 %v2025_v26  ;;  %951 = vmatprep.subr.bf16.mxu1 %v2030_v27  ;;  %v2097_v26 = vld [vmem:[#allocation8 + $0x60] ss:$8 sps:$4 sm:$0xff]  }
  0xea   :  { %920 = vmatprep.subr.bf16.mxu0 %v2033_v28  ;;  %v2102_v28 = vld [vmem:[#allocation8 + $0x54] ss:$8 sps:$4 sm:$0xff]  }
  0xec   :  { %952 = vmatpush1.bf16.msra.mxu1 %v2028_v29  ;;  %v2100_v29 = vld [vmem:[#allocation8 + $0x50] ss:$8 sps:$4 sm:$0xff]  }
  0xed   :  { %921 = vmatpush2.bf16.msra.mxu0 %v2031_v30  ;;  %953 = vmatprep.subr.bf16.mxu1 %v2036_v31  ;;  %v2105_v31 = vld [vmem:[#allocation8 + $0x44] ss:$8 sps:$4 sm:$0xff]  }
  0xee   :  { %922 = vmatprep.subr.bf16.mxu0 %v2039_v32  ;;  %v2103_v32 = vld [vmem:[#allocation8 + $0x40] ss:$8 sps:$4 sm:$0xff]  }
  0xf0   :  { %954 = vmatpush1.bf16.msra.mxu1 %v2034_v33 }
  0xf1   :  { %923 = vmatpush2.bf16.msra.mxu0 %v2037_v34  ;;  %955 = vmatprep.subr.bf16.mxu1 %v2042_v35  ;;  %v2108_v34 = vld [vmem:[#allocation8 + $0x34] ss:$8 sps:$4 sm:$0xff]  }
  0xf2   :  { %924 = vmatprep.subr.bf16.mxu0 %v2045_v36  ;;  %v2106_v36 = vld [vmem:[#allocation8 + $0x30] ss:$8 sps:$4 sm:$0xff]  }
  0xf4   :  { %956 = vmatpush1.bf16.msra.mxu1 %v2040_v37 }
  0xf5   :  { %925 = vmatpush2.bf16.msra.mxu0 %v2043_v38  ;;  %957 = vmatprep.subr.bf16.mxu1 %v2048_v39  ;;  %v2111_v38 = vld [vmem:[#allocation8 + $0x24] ss:$8 sps:$4 sm:$0xff]  }
  0xf6   :  { %926 = vmatprep.subr.bf16.mxu0 %v2051_v40  ;;  %v2109_v40 = vld [vmem:[#allocation8 + $0x20] ss:$8 sps:$4 sm:$0xff]  }
  0xf8   :  { %958 = vmatpush1.bf16.msra.mxu1 %v2046_v41 }
  0xf9   :  { %927 = vmatpush2.bf16.msra.mxu0 %v2049_v42  ;;  %959 = vmatprep.subr.bf16.mxu1 %v2054_v43  ;;  %v2114_v43 = vld [vmem:[#allocation8 + $0x14] ss:$8 sps:$4 sm:$0xff]  }
  0xfa   :  { %928 = vmatprep.subr.bf16.mxu0 %v2057_v44 }
  0xfc   :  { %960 = vmatpush1.bf16.msra.mxu1 %v2052_v45 }
  0xfd   :  { %929 = vmatpush2.bf16.msra.mxu0 %v2055_v46  ;;  %961 = vmatprep.subr.bf16.mxu1 %v2060_v47 }
  0xfe   :  { %930 = vmatprep.subr.bf16.mxu0 %v2063_v49 }
 0x100   :  { %962 = vmatpush1.bf16.msra.mxu1 %v2058_v48  ;;  %v2112_v48 = vld [vmem:[#allocation8 + $0x10] ss:$8 sps:$4 sm:$0xff]  }
 0x101   :  { %931 = vmatpush2.bf16.msra.mxu0 %v2061_v50  ;;  %963 = vmatprep.subr.bf16.mxu1 %v2066_v51  ;;  %v2117_v50 = vld [vmem:[#allocation8 + $0x4] ss:$8 sps:$4 sm:$0xff]   ;;  %v2115_v51 = vld [vmem:[#allocation8] ss:$8 sps:$4 sm:$0xff]  }
 0x102   :  { %932 = vmatprep.subr.bf16.mxu0 %v2069_v53  ;;  %v2118_v53 = vld [vmem:[#allocation8 + $0xf0] ss:$8 sps:$4 sm:$0xff]  }
 0x104   :  { %964 = vmatpush2.bf16.msra.mxu1 %v2064_v52  ;;  %v2120_v52 = vld [vmem:[#allocation8 + $0xf4] ss:$8 sps:$4 sm:$0xff]  }
 0x105   :  { %933 = vmatpush2.bf16.msra.mxu0 %v2067_v54  ;;  %965 = vmatprep.subr.bf16.mxu1 %v2072_v55  ;;  %v2123_v54 = vld [vmem:[#allocation8 + $0xe4] ss:$8 sps:$4 sm:$0xff]   ;;  %v2121_v55 = vld [vmem:[#allocation8 + $0xe0] ss:$8 sps:$4 sm:$0xff]  }
 0x106   :  { %934 = vmatprep.subr.bf16.mxu0 %v2075_v57  ;;  %v2124_v57 = vld [vmem:[#allocation8 + $0xd0] ss:$8 sps:$4 sm:$0xff]  }
 0x108   :  { %966 = vmatpush2.bf16.msra.mxu1 %v2070_v56  ;;  %v2126_v56 = vld [vmem:[#allocation8 + $0xd4] ss:$8 sps:$4 sm:$0xff]  }
 0x109   :  { %935 = vmatpush2.bf16.msra.mxu0 %v2073_v58  ;;  %967 = vmatprep.subr.bf16.mxu1 %v2078_v59  ;;  %v2129_v58 = vld [vmem:[#allocation8 + $0xc4] ss:$8 sps:$4 sm:$0xff]   ;;  %v2127_v59 = vld [vmem:[#allocation8 + $0xc0] ss:$8 sps:$4 sm:$0xff]  }
 0x10a   :  { %1208 = vmatprep.subr.bf16.mxu0 %v2096_v9  ;;  %v2145_v9 = vld [vmem:[#allocation9 + $0x60] ss:$8 sps:$4 sm:$0xff]  }
 0x10c   :  { %968 = vmatpush2.bf16.msra.mxu1 %v2076_v60  ;;  %v2132_v60 = vld [vmem:[#allocation8 + $0xb4] ss:$8 sps:$4 sm:$0xff]  }
 0x10d   :  { %969 = vmatprep.subr.bf16.mxu1 %v2081_v61  ;;  %v2130_v61 = vld [vmem:[#allocation8 + $0xb0] ss:$8 sps:$4 sm:$0xff]  }
 0x110   :  { %970 = vmatpush2.bf16.msra.mxu1 %v2079_v62  ;;  %v2135_v62 = vld [vmem:[#allocation8 + $0xa4] ss:$8 sps:$4 sm:$0xff]  }
 0x111   :  { %971 = vmatprep.subr.bf16.mxu1 %v2084_v1  ;;  %v2138_v1 = vld [vmem:[#allocation8 + $0x94] ss:$8 sps:$4 sm:$0xff]  }
 0x114   :  { %972 = vmatpush2.bf16.msra.mxu1 %v2082_v63  ;;  %v2133_v63 = vld [vmem:[#allocation8 + $0xa0] ss:$8 sps:$4 sm:$0xff]  }
 0x115   :  { %973 = vmatprep.subr.bf16.mxu1 %v2087_v3  ;;  %v2136_v3 = vld [vmem:[#allocation8 + $0x90] ss:$8 sps:$4 sm:$0xff]  }
 0x118   :  { %974 = vmatpush2.bf16.msra.mxu1 %v2085_v4  ;;  %v2141_v4 = vld [vmem:[#allocation8 + $0x84] ss:$8 sps:$4 sm:$0xff]  }
 0x119   :  { %975 = vmatprep.subr.bf16.mxu1 %v2090_v5  ;;  %v2139_v5 = vld [vmem:[#allocation8 + $0x80] ss:$8 sps:$4 sm:$0xff]  }
 0x11c   :  { %976 = vmatpush2.bf16.msra.mxu1 %v2088_v6  ;;  %v2142_v6 = vld [vmem:[#allocation9 + $0x70] ss:$8 sps:$4 sm:$0xff]  }
 0x11d   :  { %977 = vmatprep.subr.bf16.mxu1 %v2093_v7  ;;  %v2144_v7 = vld [vmem:[#allocation9 + $0x74] ss:$8 sps:$4 sm:$0xff]  }
 0x120   :  { %978 = vmatpush2.bf16.msra.mxu1 %v2091_v8  ;;  %v2147_v8 = vld [vmem:[#allocation9 + $0x64] ss:$8 sps:$4 sm:$0xff]  }
 0x121   :  { %1537 = vmatprep.subr.bf16.mxu1 %v2144_v7  ;;  %v2190_v7 = vld [vmem:[#allocation11 + $0x78] sm:$0xff]  }
 0x18b   :  { %v358_v10 = vpop.f32.mrf.mxu1  ;;  %v444_v11 = vpop.f32.mrf.mxu0 }
 0x18c   :  { %v496_v21 = vmul.f32 %v444_v11, %v358_v10  ;;  %v2150_v10 = vld [vmem:[#allocation9 + $0x54] ss:$8 sps:$4 sm:$0xff]   ;;  %v2148_v11 = vld [vmem:[#allocation9 + $0x50] ss:$8 sps:$4 sm:$0xff]  }
 0x18d   :  { %v360_v12 = vpop.f32.mrf.mxu1  ;;  %v446_v13 = vpop.f32.mrf.mxu0 }
 0x18e   :  { %v497_v19 = vmul.f32 %v446_v13, %v360_v12  ;;  %v2153_v12 = vld [vmem:[#allocation9 + $0x44] ss:$8 sps:$4 sm:$0xff]   ;;  %v2151_v13 = vld [vmem:[#allocation9 + $0x40] ss:$8 sps:$4 sm:$0xff]  }
 0x18f   :  { %v362_v14 = vpop.f32.mrf.mxu1  ;;  %v448_v15 = vpop.f32.mrf.mxu0 }
 0x190   :  { %v500_v16 = vmul.f32 %v448_v15, %v362_v14  ;;  %v2487_v15 = vsub.s32 1, %v2445_v2 }
 0x191   :  { %v364_v17 = vpop.f32.mrf.mxu1  ;;  %v450_v18 = vpop.f32.mrf.mxu0 }
 0x192   :  { %v501_v20 = vmul.f32 %v450_v18, %v364_v17  ;;  %v504_v0 = vpack.c.bf16 %v500_v16, %v496_v21  ;;  %v2490_v16 = vsub.s32 0, %v2445_v2  ;;  %v572_v18 = vld [vmem:[%s2520_s5] sm:$0x3] }
 0x194   :  { %v505_v22 = vpack.c.bf16 %v501_v20, %v497_v19  ;;  %v581_v19 = vrot.slane %v572_v18, %v2487_v15  ;;  %v577_v20 = vrot.slane %v572_v18, %v2490_v16  ;;  %v2199_v18 = vld [vmem:[#allocation11 + $0x18] sm:$0xff]  }
 0x196   :  { %936 = vmatprep.mubr.bf16.mxu0 %v505_v22 }
 0x197   :  { %v401_v25 = vpop.f32.mrf.mxu1  ;;  %937 = vmatmul.mubr.bf16.vlgmr.msra.gmra.mxu0 %v504_v0 }
 0x198   :  { %1209 = vmatpush1.bf16.msra.mxu0 %v2094_v23 }
 0x199   :  { %v403_v27 = vpop.f32.mrf.mxu1  ;;  %1210 = vmatprep.subr.bf16.mxu0 %v2099_v24 }
 0x19b   :  { %v405_v30 = vpop.f32.mrf.mxu1 }
 0x19c   :  { %1211 = vmatpush1.bf16.msra.mxu0 %v2097_v26 }
 0x19d   :  { %1212 = vmatprep.subr.bf16.mxu0 %v2102_v28  ;;  %v407_v33 = vpop.f32.mrf.mxu1 }
 0x1a0   :  { %1213 = vmatpush1.bf16.msra.mxu0 %v2100_v29 }
 0x1a1   :  { %1214 = vmatprep.subr.bf16.mxu0 %v2105_v31 }
 0x1a3   :  { %v487_v35 = vpop.f32.mrf.mxu1 }
 0x1a4   :  { %1215 = vmatpush1.bf16.msra.mxu0 %v2103_v32  ;;  %v498_v46 = vmul.f32 %v487_v35, %v401_v25 }
 0x1a5   :  { %v489_v37 = vpop.f32.mrf.mxu1  ;;  %1216 = vmatprep.subr.bf16.mxu0 %v2108_v34 }
 0x1a6   :  { %v499_v44 = vmul.f32 %v489_v37, %v403_v27 }
 0x1a7   :  { %v491_v39 = vpop.f32.mrf.mxu1 }
 0x1a8   :  { %1217 = vmatpush1.bf16.msra.mxu0 %v2106_v36  ;;  %v502_v41 = vmul.f32 %v491_v39, %v405_v30 }
 0x1a9   :  { %v493_v42 = vpop.f32.mrf.mxu1  ;;  %1218 = vmatprep.subr.bf16.mxu0 %v2111_v38 }
 0x1aa   :  { %v503_v45 = vmul.f32 %v493_v42, %v407_v33  ;;  %v506_v49 = vpack.c.bf16 %v502_v41, %v498_v46  ;;  %v2159_v46 = vld [vmem:[#allocation9 + $0x24] ss:$8 sps:$4 sm:$0xff]  }
 0x1ac   :  { %v507_v47 = vpack.c.bf16 %v503_v45, %v499_v44  ;;  %1219 = vmatpush1.bf16.msra.mxu0 %v2109_v40  ;;  %v2156_v44 = vld [vmem:[#allocation9 + $0x34] ss:$8 sps:$4 sm:$0xff]   ;;  %v2154_v45 = vld [vmem:[#allocation9 + $0x30] ss:$8 sps:$4 sm:$0xff]  }
 0x1ad   :  { %1220 = vmatprep.subr.bf16.mxu0 %v2114_v43 }
 0x1ae   :  { %979 = vmatprep.mubr.bf16.mxu1 %v507_v47  ;;  %v2157_v47 = vld [vmem:[#allocation9 + $0x20] ss:$8 sps:$4 sm:$0xff]  }
 0x1af   :  { %980 = vmatmul.mubr.bf16.vlgmr.msra.gmra.mxu1 %v506_v49  ;;  %v2160_v49 = vld [vmem:[#allocation9 + $0x10] ss:$8 sps:$4 sm:$0xff]  }
 0x1b0   :  { %1221 = vmatpush1.bf16.msra.mxu0 %v2112_v48  ;;  %1538 = vmatpush1.bf16.msra.mxu1 %v2142_v6  ;;  %v2162_v48 = vld [vmem:[#allocation9 + $0x14] ss:$8 sps:$4 sm:$0xff]   ;;  %v2187_v6 = vld [vmem:[#allocation9 + $0x80] ss:$8 sps:$4 sm:$0xff]  }
 0x1b1   :  { %1222 = vmatprep.subr.bf16.mxu0 %v2117_v50  ;;  %1539 = vmatprep.subr.bf16.mxu1 %v2147_v8  ;;  %v2165_v50 = vld [vmem:[#allocation9 + $0x4] ss:$8 sps:$4 sm:$0xff]   ;;  %v2191_v8 = vld [vmem:[#allocation11 + $0x38] sm:$0xff]  }
 0x1b4   :  { %1223 = vmatpush1.bf16.msra.mxu0 %v2115_v51  ;;  %1540 = vmatpush1.bf16.msra.mxu1 %v2145_v9  ;;  %v2163_v51 = vld [vmem:[#allocation9] ss:$8 sps:$4 sm:$0xff]   ;;  %v2192_v9 = vld [vmem:[#allocation11 + $0x70] sm:$0xff]  }
 0x1b5   :  { %1224 = vmatprep.subr.bf16.mxu0 %v2120_v52  ;;  %1541 = vmatprep.subr.bf16.mxu1 %v2150_v10  ;;  %v2168_v52 = vld [vmem:[#allocation9 + $0xf4] ss:$8 sps:$4 sm:$0xff]  }
 0x1b6   :  { %v2193_v10 = vld [vmem:[#allocation11 + $0x30] sm:$0xff]  }
 0x1b8   :  { %1225 = vmatpush2.bf16.msra.mxu0 %v2118_v53  ;;  %1542 = vmatpush1.bf16.msra.mxu1 %v2148_v11  ;;  %v2166_v53 = vld [vmem:[#allocation9 + $0xf0] ss:$8 sps:$4 sm:$0xff]   ;;  %v2194_v11 = vld [vmem:[#allocation11 + $0x68] sm:$0xff]  }
 0x1b9   :  { %1226 = vmatprep.subr.bf16.mxu0 %v2123_v54  ;;  %1543 = vmatprep.subr.bf16.mxu1 %v2153_v12  ;;  %v2171_v54 = vld [vmem:[#allocation9 + $0xe4] ss:$8 sps:$4 sm:$0xff]  }
 0x1ba   :  { %v2195_v12 = vld [vmem:[#allocation11 + $0x28] sm:$0xff]  }
 0x1bc   :  { %1227 = vmatpush2.bf16.msra.mxu0 %v2121_v55  ;;  %1544 = vmatpush1.bf16.msra.mxu1 %v2151_v13  ;;  %v2169_v55 = vld [vmem:[#allocation9 + $0xe0] ss:$8 sps:$4 sm:$0xff]  }
 0x1bd   :  { %1228 = vmatprep.subr.bf16.mxu0 %v2126_v56  ;;  %1545 = vmatprep.subr.bf16.mxu1 %v2156_v44  ;;  %v2347_v56 = vmov -inf   ;;  %v2196_v13 = vld [vmem:[#allocation11 + $0x60] sm:$0xff]  }
 0x1be   :  { %115 = vst [vmem:[#allocation2] sm:$0xf] %v2347_v56 }
 0x1c0   :  { %1229 = vmatpush2.bf16.msra.mxu0 %v2124_v57  ;;  %1546 = vmatpush1.bf16.msra.mxu1 %v2154_v45  ;;  %v2174_v57 = vld [vmem:[#allocation9 + $0xd4] ss:$8 sps:$4 sm:$0xff]  }
 0x1c1   :  { %1230 = vmatprep.subr.bf16.mxu0 %v2129_v58  ;;  %1547 = vmatprep.subr.bf16.mxu1 %v2159_v46  ;;  %v2172_v58 = vld [vmem:[#allocation9 + $0xd0] ss:$8 sps:$4 sm:$0xff]  }
 0x1c4   :  { %1231 = vmatpush2.bf16.msra.mxu0 %v2127_v59  ;;  %1548 = vmatpush1.bf16.msra.mxu1 %v2157_v47  ;;  %v2177_v59 = vld [vmem:[#allocation9 + $0xc4] ss:$8 sps:$4 sm:$0xff]  }
 0x1c5   :  { %1232 = vmatprep.subr.bf16.mxu0 %v2132_v60  ;;  %1549 = vmatprep.subr.bf16.mxu1 %v2162_v48  ;;  %v2175_v60 = vld [vmem:[#allocation9 + $0xc0] ss:$8 sps:$4 sm:$0xff]  }
 0x1c8   :  { %1233 = vmatpush2.bf16.msra.mxu0 %v2130_v61  ;;  %1550 = vmatpush1.bf16.msra.mxu1 %v2160_v49  ;;  %v2180_v61 = vld [vmem:[#allocation9 + $0xb4] ss:$8 sps:$4 sm:$0xff]  }
 0x1c9   :  { %1234 = vmatprep.subr.bf16.mxu0 %v2135_v62  ;;  %1551 = vmatprep.subr.bf16.mxu1 %v2165_v50  ;;  %v2178_v62 = vld [vmem:[#allocation9 + $0xb0] ss:$8 sps:$4 sm:$0xff]   ;;  %v2349_v50 = vmov 1983009808  }
 0x1cc   :  { %1235 = vmatpush2.bf16.msra.mxu0 %v2133_v63  ;;  %1552 = vmatpush1.bf16.msra.mxu1 %v2163_v51  ;;  %v2183_v63 = vld [vmem:[#allocation9 + $0xa4] ss:$8 sps:$4 sm:$0xff]   ;;  %v1286_v51 = vunpack.c.l.s4 %v2349_v50 }
 0x1cd   :  { %1236 = vmatprep.subr.bf16.mxu0 %v2138_v1  ;;  %1553 = vmatprep.subr.bf16.mxu1 %v2168_v52  ;;  %v2181_v1 = vld [vmem:[#allocation9 + $0xa0] ss:$8 sps:$4 sm:$0xff]  }
 0x1d0   :  { %1237 = vmatpush2.bf16.msra.mxu0 %v2136_v3  ;;  %1554 = vmatpush2.bf16.msra.mxu1 %v2166_v53  ;;  %v2186_v3 = vld [vmem:[#allocation9 + $0x94] ss:$8 sps:$4 sm:$0xff]  }
 0x1d1   :  { %1238 = vmatprep.subr.bf16.mxu0 %v2141_v4  ;;  %1555 = vmatprep.subr.bf16.mxu1 %v2171_v54  ;;  %v2184_v4 = vld [vmem:[#allocation9 + $0x90] ss:$8 sps:$4 sm:$0xff]  }
 0x1d4   :  { %1239 = vmatpush2.bf16.msra.mxu0 %v2139_v5  ;;  %1556 = vmatpush2.bf16.msra.mxu1 %v2169_v55  ;;  %v2189_v5 = vld [vmem:[#allocation9 + $0x84] ss:$8 sps:$4 sm:$0xff]  }
 0x1d5   :  { %1557 = vmatprep.subr.bf16.mxu1 %v2174_v57  ;;  %1957 = vmatprep.subr.bf16.mxu0 %v2190_v7 }
 0x1d8   :  { %1558 = vmatpush2.bf16.msra.mxu1 %v2172_v58  ;;  %v1287_v58 = vunpack.c.0.s8 %v1286_v51 }
 0x1d9   :  { %1559 = vmatprep.subr.bf16.mxu1 %v2177_v59 }
 0x1dc   :  { %1560 = vmatpush2.bf16.msra.mxu1 %v2175_v60 }
 0x1dd   :  { %1561 = vmatprep.subr.bf16.mxu1 %v2180_v61 }
 0x1e0   :  { %1562 = vmatpush2.bf16.msra.mxu1 %v2178_v62 }
 0x1e1   :  { %1563 = vmatprep.subr.bf16.mxu1 %v2183_v63 }
 0x1e4   :  { %1564 = vmatpush2.bf16.msra.mxu1 %v2181_v1  ;;  %v1290_v1 = vsub.s32 %v1287_v58, %v2445_v2  ;;  %v2201_v2 = vld [vmem:[#allocation11 + $0x10] sm:$0xff]  }
 0x1e5   :  { %1565 = vmatprep.subr.bf16.mxu1 %v2186_v3 }
 0x1e8   :  { %1566 = vmatpush2.bf16.msra.mxu1 %v2184_v4 }
 0x1e9   :  { %1567 = vmatprep.subr.bf16.mxu1 %v2189_v5 }
 0x1ec   :  { %1568 = vmatpush2.bf16.msra.mxu1 %v2187_v6 }
 0x257   :  { %v938_v14 = vpop.f32.mrf.mxu0 }
 0x258   :  { %v939_v0 = vadd.f32 %v938_v14, %v577_v20  ;;  %v2197_v14 = vld [vmem:[#allocation11 + $0x20] sm:$0xff]  }
 0x259   :  { %v940_v17 = vpop.f32.mrf.mxu0 }
 0x25a   :  { %v941_v23 = vadd.f32 %v940_v17, %v581_v19  ;;  %v2198_v17 = vld [vmem:[#allocation11 + $0x58] sm:$0xff]  }
 0x25b   :  { %v942_v21 = vpop.f32.mrf.mxu0 }
 0x25c   :  { %v943_v26 = vadd.f32 %v942_v21, %v577_v20  ;;  %v1036_v20 = vld [vmem:[%s2522_s7] sm:$0x3] }
 0x25d   :  { %v944_v24 = vpop.f32.mrf.mxu0  ;;  %v1041_v21 = vrot.slane %v1036_v20, %v2490_v16 }
 0x25e   :  { %v945_v30 = vadd.f32 %v944_v24, %v581_v19  ;;  %v2200_v19 = vld [vmem:[#allocation11 + $0x50] sm:$0xff]  }
 0x26f   :  { %v981_v22 = vpop.f32.mrf.mxu1 }
 0x270   :  { %v982_v28 = vadd.f32 %v981_v22, %v939_v0  ;;  %v1045_v22 = vrot.slane %v1036_v20, %v2487_v15  ;;  %v2203_v20 = vld [vmem:[#allocation11 + $0x8] sm:$0xff]  }
 0x271   :  { %v983_v25 = vpop.f32.mrf.mxu1 }
 0x272   :  { %v984_v27 = vadd.f32 %v983_v25, %v941_v23  ;;  %v994_v36 = vmul.f32 0.01, %v982_v28  ;;  %vm990_vm15 = vcmp.gt.f32.partialorder %v982_v28, 0.0  ;;  %v2348_v23 = vmov -1e+30  }
 0x273   :  { %v985_v29 = vpop.f32.mrf.mxu1  ;;  %v134_v0 = vsel %vm133_vm1, 0.0, %v2348_v23  ;;  %v1365_v23 = vld [vmem:[%s2524_s9] sm:$0x3] }
 0x274   :  { %v986_v31 = vadd.f32 %v985_v29, %v943_v26  ;;  %v995_v33 = vmul.f32 0.01, %v984_v27  ;;  %vm991_vm14 = vcmp.gt.f32.partialorder %v984_v27, 0.0  ;;  %v998_v41 = vsel %vm990_vm15, %v982_v28, %v994_v36 }
 0x275   :  { %v987_v32 = vpop.f32.mrf.mxu1 }
 0x276   :  { %vm992_vm13 = vcmp.gt.f32.partialorder %v986_v31, 0.0  ;;  %v996_v34 = vmul.f32 0.01, %v986_v31  ;;  %v988_v35 = vadd.f32 %v987_v32, %v945_v30  ;;  %v999_v39 = vsel %vm991_vm14, %v984_v27, %v995_v33 }
 0x278   :  { %vm993_vm0 = vcmp.gt.f32.partialorder %v988_v35, 0.0  ;;  %v997_v37 = vmul.f32 0.01, %v988_v35  ;;  %v1000_v38 = vsel %vm992_vm13, %v986_v31, %v996_v34 }
 0x279   :  { %v1002_v43 = vpack.c.bf16 %v1000_v38, %v998_v41 }
 0x27a   :  { %v1001_v40 = vsel %vm993_vm0, %v988_v35, %v997_v37 }
 0x27b   :  { %v1003_v42 = vpack.c.bf16 %v1001_v40, %v999_v39 }
 0x27d   :  { %1240 = vmatprep.mubr.bf16.mxu0 %v1003_v42 }
 0x27e   :  { %1241 = vmatmul.mubr.bf16.vlgmr.msra.gmra.mxu0 %v1002_v43 }
 0x27f   :  { %1958 = vmatpush3.bf16.msra.mxu0 %v2191_v8  ;;  %v1255_v8 = vld [vmem:[#allocation2] sm:$0xf] }
 0x280   :  { %1959 = vmatprep.subr.bf16.mxu0 %v2192_v9 }
 0x283   :  { %1960 = vmatpush3.bf16.msra.mxu0 %v2193_v10 }
 0x284   :  { %1961 = vmatprep.subr.bf16.mxu0 %v2194_v11 }
 0x287   :  { %1962 = vmatpush3.bf16.msra.mxu0 %v2195_v12 }
 0x288   :  { %1963 = vmatprep.subr.bf16.mxu0 %v2196_v13 }
 0x28b   :  { %1964 = vmatpush3.bf16.msra.mxu0 %v2197_v14 }
 0x28c   :  { %1965 = vmatprep.subr.bf16.mxu0 %v2198_v17 }
 0x28f   :  { %1966 = vmatpush3.bf16.msra.mxu0 %v2199_v18 }
 0x290   :  { %1967 = vmatprep.subr.bf16.mxu0 %v2200_v19  ;;  %v2202_v19 = vld [vmem:[#allocation11 + $0x48] sm:$0xff]  }
 0x293   :  { %1968 = vmatpush3.bf16.msra.mxu0 %v2201_v2 }
 0x294   :  { %1969 = vmatprep.subr.bf16.mxu0 %v2202_v19 }
 0x297   :  { %1970 = vmatpush3.bf16.msra.mxu0 %v2203_v20 }
 0x33e   :  { %v1242_v24 = vpop.f32.mrf.mxu0 }
 0x33f   :  { %v1243_v25 = vadd.f32 %v1242_v24, %v1041_v21  ;;  %v1374_v24 = vrot.slane %v1365_v23, %v2487_v15  ;;  %v1940_v15 = vld [vmem:[%s2526_s11] ss:$0 sm:$0xff] }
 0x340   :  { %v1244_v26 = vpop.f32.mrf.mxu0 }
 0x341   :  { %v1251_v27 = vadd.f32 %v1243_v25, %v134_v0  ;;  %v1245_v28 = vadd.f32 %v1244_v26, %v1045_v22 }
 0x342   :  { %v1246_v29 = vpop.f32.mrf.mxu0 }
 0x343   :  { %v1256_v30 = vrot.slane %v1251_v27, 4  ;;  %v1252_v31 = vadd.f32 %v1245_v28, %v134_v0  ;;  %v1247_v32 = vadd.f32 %v1246_v29, %v1041_v21  ;;  %v2204_v21 = vld [vmem:[#allocation11 + $0x40] sm:$0xff]  }
 0x344   :  { %v1248_v33 = vpop.f32.mrf.mxu0  ;;  %1971 = vmatprep.subr.bf16.mxu0 %v2204_v21 }
 0x345   :  { %v1257_v34 = vmax.f32 %v1251_v27, %v1256_v30  ;;  %v1262_v35 = vrot.slane %v1252_v31, 4  ;;  %v1253_v36 = vadd.f32 %v1247_v32, %v134_v0  ;;  %v1249_v37 = vadd.f32 %v1248_v33, %v1045_v22  ;;  %v2205_v22 = vld [vmem:[#allocation11] sm:$0xff]  }
 0x346   :  { %1972 = vmatpush3.bf16.msra.mxu0 %v2205_v22 }
 0x347   :  { %v1258_v38 = vrot.slane %v1257_v34, 2  ;;  %v1263_v39 = vmax.f32 %v1252_v31, %v1262_v35  ;;  %v1268_v40 = vrot.slane %v1253_v36, 4  ;;  %v1254_v41 = vadd.f32 %v1249_v37, %v134_v0 }
 0x348   :  { %v1370_v0 = vrot.slane %v1365_v23, %v2490_v16 }
 0x349   :  { %v1264_v42 = vrot.slane %v1263_v39, 2  ;;  %v1269_v43 = vmax.f32 %v1253_v36, %v1268_v40  ;;  %v1274_v44 = vrot.slane %v1254_v41, 4  ;;  %v1259_v45 = vmax.f32 %v1257_v34, %v1258_v38 }
 0x34b   :  { %v1265_v46 = vmax.f32 %v1263_v39, %v1264_v42  ;;  %v1270_v47 = vrot.slane %v1269_v43, 2  ;;  %v1275_v48 = vmax.f32 %v1254_v41, %v1274_v44  ;;  %v1260_v54 = vrot.slane %v1259_v45, 1 }
 0x34d   :  { %v1266_v49 = vrot.slane %v1265_v46, 1  ;;  %v1271_v52 = vmax.f32 %v1269_v43, %v1270_v47  ;;  %v1276_v53 = vrot.slane %v1275_v48, 2  ;;  %v1261_v60 = vmax.f32 %v1259_v45, %v1260_v54 }
 0x34f   :  { %v1272_v55 = vrot.slane %v1271_v52, 1  ;;  %v1277_v56 = vmax.f32 %v1275_v48, %v1276_v53  ;;  %v1267_v57 = vmax.f32 %v1265_v46, %v1266_v49 }
 0x351   :  { %v1278_v59 = vrot.slane %v1277_v56, 1  ;;  %v1273_v61 = vmax.f32 %v1271_v52, %v1272_v55  ;;  %v1284_v63 = vcombine.low %v1261_v60, %v1267_v57 }
 0x353   :  { %v1279_v62 = vmax.f32 %v1277_v56, %v1278_v59  ;;  %v1291_v5 = vrot.slane %v1284_v63, %v1290_v1 }
 0x355   :  { %v1292_v3 = vcombine.low %v1273_v61, %v1279_v62 }
 0x357   :  { %v1299_v4 = vrot.slane %v1292_v3, %v1290_v1 }
 0x359   :  { %v1304_v6 = vrot.slane %v1299_v4, 7 }
 0x35b   :  { %v1306_v7 = vsel %vm1305_vm2, %v1304_v6, %v1291_v5 }
 0x35c   :  { %v1308_v9 = vsel %vm1307_vm3, %v1304_v6, %v1306_v7 }
 0x35d   :  { %v1310_v10 = vsel %vm1309_vm4, %v1304_v6, %v1308_v9 }
 0x35e   :  { %v1312_v11 = vsel %vm1311_vm5, %v1304_v6, %v1310_v10 }
 0x35f   :  { %v1314_v12 = vmax.f32 %v1255_v8, %v1312_v11 }
 0x361   :  { %1315 = vst [vmem:[#allocation2] sm:$0xf] %v1314_v12 }
 0x368   :  { %v1907_v13 = vld.sshfl [vmem:[#allocation2] sm:$0x33 pattern:$0x76325410] }
 0x369   :  { %v1328_v14 = vcombine.high %v1907_v13, %v1907_v13  ;;  %v1331_v18 = vpack.c.bf16 %v1907_v13, %v1907_v13 }
 0x36b   :  { %v1332_v17 = vpack.c.bf16 %v1328_v14, %v1328_v14 }
 0x36d   :  { %1569 = vmatprep.mubr.bf16.mxu1 %v1332_v17 }
 0x36e   :  { %1570 = vmatmul.mubr.bf16.vlgmr.msra.gmra.mxu1 %v1331_v18 }
 0x42e   :  { %v1571_v25 = vpop.f32.mrf.mxu1 }
 0x42f   :  { %v1572_v26 = vadd.f32 %v1571_v25, %v1370_v0 }
 0x430   :  { %v1573_v27 = vpop.f32.mrf.mxu1 }
 0x431   :  { %vm1578_vm6 = vcmp.gt.f32.partialorder %v1572_v26, 0.0  ;;  %v1580_v28 = vmul.f32 0.01, %v1572_v26  ;;  %v1574_v29 = vadd.f32 %v1573_v27, %v1374_v24 }
 0x432   :  { %v1575_v30 = vpop.f32.mrf.mxu1 }
 0x433   :  { %vm1579_vm7 = vcmp.gt.f32.partialorder %v1574_v29, 0.0  ;;  %v1581_v31 = vmul.f32 0.01, %v1574_v29  ;;  %v1582_v32 = vsel %vm1578_vm6, %v1572_v26, %v1580_v28 }
 0x434   :  { %v1576_v33 = vpop.f32.mrf.mxu1  ;;  %v1584_v36 = vpack.c.bf16 %v1582_v32, %v1582_v32 }
 0x435   :  { %v1583_v34 = vsel %vm1579_vm7, %v1574_v29, %v1581_v31 }
 0x436   :  { %v1585_v35 = vpack.c.bf16 %v1583_v34, %v1583_v34 }
 0x438   :  { %1753 = vmatprep.mubr.bf16.mxu0 %v1585_v35 }
 0x439   :  { %1754 = vmatmul.mubr.bf16.vlgmr.msra.gmra.mxu0 %v1584_v36 }
 0x4f9   :  { %v1973_v37 = vpop.f32.mrf.mxu0 }
 0x4fb   :  { %v1974_v16 = vpop.f32.mrf.mxu0 }
 0x4fc   :  { %v1975_v38 = vadd.f32 %v1974_v16, %v1973_v37 }
 0x4fd   :  { %v1976_v39 = vpop.f32.mrf.mxu0 }
 0x4fe   :  { %v1756_v40 = vadd.f32 %v1975_v38, %v1940_v15 }
 0x4ff   :  { %v1977_v41 = vpop.f32.mrf.mxu0 }
 0x500   :  { %1761 = vst [vmem:[#allocation12] sm:$0x3] %v1756_v40 }
 0x501   :  { %2317 = shalt.err (!%p2314_p1)
}
 0x502   :  { %1771 = dma.vmem_to_hbm [thread:$0]  %s1769_s8, 32, %s2527_s12, [#allocation5]  }
 0x503   :  { %2332 = dma.done.wait [#allocation5], 32  }
 0x504   :  { %2333 = vsyncadd [#allocation5], 4294967264 }
 0x505   :  { %1775 = vsyncpa [#allocation4], 1 }
 0x506   :  { %1776 = vsyncpa [#allocation7], 1 }
 0x507   :  { %1777 = vsyncpa [#allocation10], 1 }
 0x508   :  { %1778 = vsyncpa [#allocation5], 1 }

// kernel: tpu_custom_call.1
= control target key start
LH: loop header
LB: loop body
LE: loop exit
PB: predicated region body
PF: predicated region fallthrough
CT: control target
= control target key end

     0   :  { %17 = vsyncpa [#allocation4], 0  ;;  %s2515_s0 = inlined_call_operand.vmem [shape: s32[2,8,1], index: 0, kind: input, shape index: {}]   ;;  %s2516_s1 = inlined_call_operand.vmem [shape: s32[2,8,1], index: 1, kind: input, shape index: {}]   ;;  %s2517_s2 = inlined_call_operand.vmem [shape: s32[2,1,1], index: 2, kind: input, shape index: {}]   ;;  %s2518_s3 = inlined_call_operand.hbm [shape: bf16[48,1024], index: 3, kind: input, shape index: {}]   ;;  %s2519_s4 = inlined_call_operand.hbm [shape: bf16[512,256], index: 4, kind: input, shape index: {}]   ;;  %s2520_s5 = inlined_call_operand.vmem [shape: f32[1,256], index: 5, kind: input, shape index: {}]   ;;  %s2521_s6 = inlined_call_operand.hbm [shape: bf16[256,256], index: 6, kind: input, shape index: {}]   ;;  %s2522_s7 = inlined_call_operand.vmem [shape: f32[1,256], index: 7, kind: input, shape index: {}]   ;;  %s2523_s8 = inlined_call_operand.hbm [shape: bf16[256,256], index: 8, kind: input, shape index: {}]   ;;  %s2524_s9 = inlined_call_operand.vmem [shape: f32[1,256], index: 9, kind: input, shape index: {}]   ;;  %s2525_s10 = inlined_call_operand.hbm [shape: bf16[256,128], index: 10, kind: input, shape index: {}]   ;;  %s2526_s11 = inlined_call_operand.vmem [shape: f32[1,128], index: 11, kind: input, shape index: {}]   ;;  %s2527_s12 = inlined_call_operand.hbm [shape: f32[2,128], index: 12, kind: output, shape index: {}]  }
   0x1   :  { %18 = vsyncpa [#allocation7], 0 }
   0x2   :  { %19 = vsyncpa [#allocation10], 0 }
   0x3   :  { %20 = vsyncpa [#allocation5], 0  ;;  %s2334_s21 = smov [#allocation6]  }
   0x4   :  { %s44_s22 = sshll.u32 %s2334_s21, 4  ;;  %s45_s22 = int_to_ptr.vmem [resolvable:$true] %s44_s22 }
   0x5   :  { %s2214_s23 = scalar_lea.vmem %s45_s22, 8192  ;;  %p2219_p1 = scmp.lt.s32.totalorder %s45_s22, %s45_s22 }
   0x6   :  { %p2215_p0 = scmp.ne.s32.totalorder %s45_s22, %s2214_s23  ;;  %p2220_p2 = scmp.lt.s32.totalorder %s2214_s23, %s2214_s23 }
   0x8   :  { %p2221_p3 = por %p2220_p2, %p2219_p1 }
   0xa   :  { %p2222_p4 = pnand %p2221_p3, %p2215_p0 }
   0xc   :  { %2225 = shalt.err (!%p2222_p4)
}
   0xd   :  { %s2335_s24 = smov 128   ;;  %s2336_s25 = smov 8  }
   0xe   :  { %50 = dma.hbm_to_vmem [thread:$0]  %s2519_s4, 8192, %s45_s22, [#allocation7], %s2335_s24, %s2335_s24, %s2336_s25  }
   0xf   :  { %s2337_s28 = smov [#allocation9]   ;;  %s2338_s30 = smov [#allocation3]  }
  0x10   :  { %s72_s29 = sshll.u32 %s2337_s28, 4  ;;  %s32_s13 = sshll.u32 %s2338_s30, 4  ;;  %s73_s29 = int_to_ptr.vmem [resolvable:$true] %s72_s29  ;;  %s33_s13 = int_to_ptr.vmem [resolvable:$true] %s32_s13 }
  0x11   :  { %s2234_s14 = scalar_lea.vmem %s73_s29, 4096  ;;  %p2239_p6 = scmp.lt.s32.totalorder %s73_s29, %s73_s29 }
  0x12   :  { %p2235_p5 = scmp.ne.s32.totalorder %s73_s29, %s2234_s14  ;;  %p2240_p7 = scmp.lt.s32.totalorder %s2234_s14, %s2234_s14 }
  0x14   :  { %p2241_p8 = por %p2240_p7, %p2239_p6 }
  0x16   :  { %p2242_p9 = pnand %p2241_p8, %p2235_p5 }
  0x18   :  { %2245 = shalt.err (!%p2242_p9)
}
  0x19   :  { %78 = dma.hbm_to_vmem [thread:$0]  %s2523_s8, 4096, %s73_s29, [#allocation10], %s2335_s24, %s2335_s24, %s2336_s25  }
  0x1a   :  { %s2254_s4 = scalar_lea.vmem %s33_s13, 3072  ;;  %p2259_p11 = scmp.lt.s32.totalorder %s33_s13, %s33_s13 }
  0x1b   :  { %p2255_p10 = scmp.ne.s32.totalorder %s33_s13, %s2254_s4  ;;  %p2260_p12 = scmp.lt.s32.totalorder %s2254_s4, %s2254_s4 }
  0x1d   :  { %p2261_p13 = por %p2260_p12, %p2259_p11 }
  0x1f   :  { %p2262_p0 = pnand %p2261_p13, %p2255_p10 }
  0x21   :  { %2265 = shalt.err (!%p2262_p0)
}
  0x22   :  { %s2339_s17 = smov 512   ;;  %s2340_s18 = smov 32  }
  0x23   :  { %38 = dma.hbm_to_vmem [thread:$0]  %s2518_s3, 3072, %s33_s13, [#allocation4], %s2339_s17, %s2339_s17, %s2340_s18  }
  0x24   :  { %s2341_s21 = smov [#allocation8]   ;;  %s2342_s23 = smov [#allocation11]  }
  0x25   :  { %s58_s22 = sshll.u32 %s2341_s21, 4  ;;  %s86_s26 = sshll.u32 %s2342_s23, 4  ;;  %s59_s22 = int_to_ptr.vmem [resolvable:$true] %s58_s22  ;;  %s87_s26 = int_to_ptr.vmem [resolvable:$true] %s86_s26 }
  0x26   :  { %s2274_s8 = scalar_lea.vmem %s59_s22, 4096  ;;  %p2279_p2 = scmp.lt.s32.totalorder %s59_s22, %s59_s22 }
  0x27   :  { %p2275_p1 = scmp.ne.s32.totalorder %s59_s22, %s2274_s8  ;;  %p2280_p3 = scmp.lt.s32.totalorder %s2274_s8, %s2274_s8 }
  0x29   :  { %p2281_p4 = por %p2280_p3, %p2279_p2 }
  0x2b   :  { %p2282_p5 = pnand %p2281_p4, %p2275_p1 }
  0x2d   :  { %2285 = shalt.err (!%p2282_p5)
}
  0x2e   :  { %64 = dma.hbm_to_vmem [thread:$0]  %s2521_s6, 4096, %s59_s22, [#allocation7], %s2335_s24, %s2335_s24, %s2336_s25  }
  0x2f   :  { %s2294_s3 = scalar_lea.vmem %s87_s26, 2048  ;;  %p2299_p7 = scmp.lt.s32.totalorder %s87_s26, %s87_s26 }
  0x30   :  { %p2295_p6 = scmp.ne.s32.totalorder %s87_s26, %s2294_s3  ;;  %p2300_p8 = scmp.lt.s32.totalorder %s2294_s3, %s2294_s3 }
  0x32   :  { %p2301_p9 = por %p2300_p8, %p2299_p7 }
  0x34   :  { %p2302_p10 = pnand %p2301_p9, %p2295_p6 }
  0x36   :  { %2305 = shalt.err (!%p2302_p10)
}
  0x37   :  { %s2343_s29 = smov 64   ;;  %s2344_s30 = smov 4  }
  0x38   :  { %92 = dma.hbm_to_vmem [thread:$0]  %s2525_s10, 2048, %s87_s26, [#allocation10], %s2343_s29, %s2343_s29, %s2344_s30  }
  0x39   :  { %2326 = dma.done.wait [#allocation4], 3072  }
  0x3a   :  { %2327 = vsyncadd [#allocation4], 4294964224 }
  0x3b   :  { %2328 = dma.done.wait [#allocation7], 12288  }
  0x3c   :  { %2329 = vsyncadd [#allocation7], 4294955008 }
  0x3d   :  { %2330 = dma.done.wait [#allocation10], 6144  }
  0x3e   :  { %2331 = vsyncadd [#allocation10], 4294961152  ;;  %v2345_v0 = vmov 0   ;;  %v117_v1 = vlaneseq  ;;  %v137_v3 = vld [vmem:[%s2516_s1] sm:$0xff]  ;;  %v138_v5 = vld [vmem:[%s2516_s1 + $0x8] sm:$0xff]  ;;  %v2346_v49 = vmov 0.0  }
  0x3f   :  { %1997 = vset.pattern.permute.xlu1 %v2345_v0  ;;  %1996 = vset.pattern.permute.xlu0 %v2345_v0  ;;  %v135_v4 = vld [vmem:[%s2515_s0] sm:$0xff]  ;;  %v136_v6 = vld [vmem:[%s2515_s0 + $0x8] sm:$0xff]  ;;  %v194_v11 = vld [vmem:[#allocation3 + $0x90] sm:$0xff]  ;;  %vm320_vm12 = vcmask 392192   ;;  %s2350_s26 = smov [#allocation12]  }
  0x40   :  { %356 = vmatprep.mubr.bf16.mxu1 %v2345_v0  ;;  %442 = vmatprep.mubr.bf16.mxu0 %v2345_v0  ;;  %v2445_v2 = vshrl.u32 %v117_v1, 7  ;;  %v1780_v7 = vld [vmem:[%s2517_s2 + $0x1] ss:$0 sm:$0xff]  ;;  %v1779_v8 = vld [vmem:[%s2517_s2] ss:$0 sm:$0xff]  ;;  %v192_v9 = vld [vmem:[#allocation3 + $0x80] sm:$0xff] }
  0x41   :  { %150 = vperm.xlu1 %1997, %v137_v3   ;;  %142 = vperm.xlu0 %1996, %v135_v4   ;;  %v196_v10 = vld [vmem:[#allocation3 + $0xa0] sm:$0xff]  ;;  %v198_v14 = vld [vmem:[#allocation3 + $0xb0] sm:$0xff]  ;;  %v193_v31 = vld [vmem:[#allocation3 + $0x88] sm:$0xff]  ;;  %v140_v42 = vand.u32 127, %v117_v1  ;;  %s1768_s8 = sshll.u32 %s2350_s26, 4  ;;  %s1769_s8 = int_to_ptr.vmem [resolvable:$true] %s1768_s8 }
  0x42   :  { %vm132_vm0 = vcmp.lt.s32.totalorder %v2445_v2, %v1780_v7  ;;  %vm131_vm1 = vcmp.lt.s32.totalorder %v2445_v2, %v1779_v8  ;;  %v1800_v12 = vcombine.high %v192_v9, %v196_v10  ;;  %v1799_v13 = vcombine.low %v192_v9, %v196_v10  ;;  %v184_v15 = vld [vmem:[#allocation3 + $0x40] sm:$0xff]  ;;  %v186_v20 = vld [vmem:[#allocation3 + $0x50] sm:$0xff]  ;;  %v197_v32 = vld [vmem:[#allocation3 + $0xa8] sm:$0xff]  ;;  %s2306_s27 = scalar_lea.vmem %s1769_s8, 32  ;;  %p2311_p12 = scmp.lt.s32.totalorder %s1769_s8, %s1769_s8 }
  0x43   :  { %v188_v16 = vld [vmem:[#allocation3 + $0x60] sm:$0xff]  ;;  %v1804_v17 = vcombine.high %v194_v11, %v198_v14  ;;  %v1803_v18 = vcombine.low %v194_v11, %v198_v14  ;;  %v190_v21 = vld [vmem:[#allocation3 + $0x70] sm:$0xff]  ;;  %v160_v27 = vsel %vm132_vm0, 1, %v2345_v0  ;;  %v159_v28 = vsel %vm131_vm1, 1, %v2345_v0  ;;  %v185_v47 = vld [vmem:[#allocation3 + $0x48] sm:$0xff]  ;;  %p2307_p11 = scmp.ne.s32.totalorder %s1769_s8, %s2306_s27  ;;  %p2312_p13 = scmp.lt.s32.totalorder %s2306_s27, %s2306_s27 }
  0x44   :  { %v1792_v19 = vcombine.high %v184_v15, %v188_v16  ;;  %v176_v22 = vld [vmem:[#allocation3] sm:$0xff]  ;;  %v1796_v23 = vcombine.high %v186_v20, %v190_v21  ;;  %v178_v25 = vld [vmem:[#allocation3 + $0x10] sm:$0xff]  ;;  %334 = vmatprep.subr.bf16.mxu1 %v1800_v12  ;;  %v1791_v29 = vcombine.low %v184_v15, %v188_v16  ;;  %v1795_v30 = vcombine.low %v186_v20, %v190_v21  ;;  %v189_v48 = vld [vmem:[#allocation3 + $0x68] sm:$0xff] }
  0x45   :  { %153 = vperm.xlu1 %1997, %v138_v5   ;;  %145 = vperm.xlu0 %1996, %v136_v6   ;;  %v180_v24 = vld [vmem:[#allocation3 + $0x20] sm:$0xff]  ;;  %v182_v26 = vld [vmem:[#allocation3 + $0x30] sm:$0xff]  ;;  %v1801_v35 = vcombine.low %v193_v31, %v197_v32  ;;  %v1802_v38 = vcombine.high %v193_v31, %v197_v32  ;;  %v1794_v53 = vcombine.high %v185_v47, %v189_v48  ;;  %v177_v55 = vld [vmem:[#allocation3 + $0x8] sm:$0xff]  ;;  %vm133_vm1 = vcmp.lt.s32.totalorder %v2445_v2, 7  ;;  %p2313_p0 = por %p2312_p13, %p2311_p12 }
  0x46   :  { %420 = vmatprep.subr.bf16.mxu0 %v1804_v17  ;;  %335 = vmatpush1.bf16.msra.mxu1 %v1799_v13  ;;  %v1784_v33 = vcombine.high %v176_v22, %v180_v24  ;;  %v1788_v34 = vcombine.high %v178_v25, %v182_v26  ;;  %v1783_v36 = vcombine.low %v176_v22, %v180_v24  ;;  %v2000_v39 = vld [vmem:[#allocation6 + $0x74] ss:$8 sps:$4 sm:$0xff]   ;;  %v1998_v54 = vld [vmem:[#allocation6 + $0x70] ss:$8 sps:$4 sm:$0xff]   ;;  %v181_v56 = vld [vmem:[#allocation3 + $0x28] sm:$0xff] }
  0x47   :  { %421 = vmatpush1.bf16.msra.mxu0 %v1803_v18  ;;  %336 = vmatprep.subr.bf16.mxu1 %v1792_v19  ;;  %v1787_v37 = vcombine.low %v178_v25, %v182_v26  ;;  %v2003_v57 = vld [vmem:[#allocation6 + $0x64] ss:$8 sps:$4 sm:$0xff]   ;;  %v1793_v58 = vcombine.low %v185_v47, %v189_v48  ;;  %v1786_v59 = vcombine.high %v177_v55, %v181_v56  ;;  %v2001_v60 = vld [vmem:[#allocation6 + $0x60] ss:$8 sps:$4 sm:$0xff]   ;;  %v195_v61 = vld [vmem:[#allocation3 + $0x98] sm:$0xff]  ;;  %p2314_p1 = pnand %p2313_p0, %p2307_p11 }
  0x48   :  { %422 = vmatprep.subr.bf16.mxu0 %v1796_v23  ;;  %v199_v62 = vld [vmem:[#allocation3 + $0xb8] sm:$0xff]  ;;  %v1785_v1 = vcombine.low %v177_v55, %v181_v56  ;;  %v2009_v7 = vld [vmem:[#allocation6 + $0x44] ss:$8 sps:$4 sm:$0xff]   ;;  %v2007_v10 = vld [vmem:[#allocation6 + $0x40] ss:$8 sps:$4 sm:$0xff]  }
  0x49   :  { %165 = vperm.xlu1 %1997, %v160_v27   ;;  %162 = vperm.xlu0 %1996, %v159_v28   ;;  %v2006_v63 = vld [vmem:[#allocation6 + $0x54] ss:$8 sps:$4 sm:$0xff]   ;;  %v1806_v3 = vcombine.high %v195_v61, %v199_v62  ;;  %v2004_v4 = vld [vmem:[#allocation6 + $0x50] ss:$8 sps:$4 sm:$0xff]   ;;  %v1805_v8 = vcombine.low %v195_v61, %v199_v62  ;;  %v2015_v17 = vld [vmem:[#allocation6 + $0x24] ss:$8 sps:$4 sm:$0xff]  }
  0x4a   :  { %337 = vmatpush1.bf16.msra.mxu1 %v1791_v29  ;;  %v187_v5 = vld [vmem:[#allocation3 + $0x58] sm:$0xff]  ;;  %v2013_v19 = vld [vmem:[#allocation6 + $0x20] ss:$8 sps:$4 sm:$0xff]   ;;  %v2027_v24 = vld [vmem:[#allocation6 + $0x4] ss:$8 sps:$4 sm:$0xff]  }
  0x4b   :  { %423 = vmatpush1.bf16.msra.mxu0 %v1795_v30  ;;  %338 = vmatprep.subr.bf16.mxu1 %v1784_v33  ;;  %v191_v6 = vld [vmem:[#allocation3 + $0x78] sm:$0xff]  ;;  %v2022_v25 = vld [vmem:[#allocation6 + $0x160] ss:$8 sps:$4 sm:$0xff]   ;;  %v2036_v31 = vld [vmem:[#allocation6 + $0x144] ss:$8 sps:$4 sm:$0xff]  }
  0x4c   :  { %424 = vmatprep.subr.bf16.mxu0 %v1788_v34  ;;  %v1798_v9 = vcombine.high %v187_v5, %v191_v6  ;;  %v179_v11 = vld [vmem:[#allocation3 + $0x18] sm:$0xff]  ;;  %v1797_v14 = vcombine.low %v187_v5, %v191_v6  ;;  %v2025_v26 = vld [vmem:[#allocation6] ss:$8 sps:$4 sm:$0xff]   ;;  %v2039_v32 = vld [vmem:[#allocation6 + $0xe4] ss:$8 sps:$4 sm:$0xff]  }
  0x4d   :  { %v183_v12 = vld [vmem:[#allocation3 + $0x38] sm:$0xff]  ;;  %v2034_v33 = vld [vmem:[#allocation6 + $0x140] ss:$8 sps:$4 sm:$0xff]   ;;  %v2060_v47 = vld [vmem:[#allocation6 + $0x104] ss:$8 sps:$4 sm:$0xff]  }
  0x4e   :  { %339 = vmatpush1.bf16.msra.mxu1 %v1783_v36  ;;  %v2012_v13 = vld [vmem:[#allocation6 + $0x34] ss:$8 sps:$4 sm:$0xff]   ;;  %v1790_v15 = vcombine.high %v179_v11, %v183_v12  ;;  %v2010_v16 = vld [vmem:[#allocation6 + $0x30] ss:$8 sps:$4 sm:$0xff]   ;;  %v1789_v18 = vcombine.low %v179_v11, %v183_v12  ;;  %v2037_v34 = vld [vmem:[#allocation6 + $0xe0] ss:$8 sps:$4 sm:$0xff]  }
  0x4f   :  { %425 = vmatpush1.bf16.msra.mxu0 %v1787_v37  ;;  %377 = vmatprep.subr.bf16.mxu1 %v1802_v38  ;;  %v2018_v20 = vld [vmem:[#allocation6 + $0x174] ss:$8 sps:$4 sm:$0xff]   ;;  %v2016_v22 = vld [vmem:[#allocation6 + $0x170] ss:$8 sps:$4 sm:$0xff]   ;;  %v2058_v48 = vld [vmem:[#allocation6 + $0x100] ss:$8 sps:$4 sm:$0xff]  }
  0x50   :  { %904 = vmatprep.subr.bf16.mxu0 %v2000_v39  ;;  %v2021_v21 = vld [vmem:[#allocation6 + $0x14] ss:$8 sps:$4 sm:$0xff]   ;;  %v2019_v23 = vld [vmem:[#allocation6 + $0x10] ss:$8 sps:$4 sm:$0xff]   ;;  %v2048_v39 = vld [vmem:[#allocation6 + $0x124] ss:$8 sps:$4 sm:$0xff]  }
  0x51   :  { %v2030_v27 = vld [vmem:[#allocation6 + $0x154] ss:$8 sps:$4 sm:$0xff]   ;;  %v2028_v29 = vld [vmem:[#allocation6 + $0x150] ss:$8 sps:$4 sm:$0xff]   ;;  %v2072_v55 = vld [vmem:[#allocation6 + $0x1e4] ss:$8 sps:$4 sm:$0xff]  }
  0x52   :  { %v2033_v28 = vld [vmem:[#allocation6 + $0xf4] ss:$8 sps:$4 sm:$0xff]   ;;  %v2031_v30 = vld [vmem:[#allocation6 + $0xf0] ss:$8 sps:$4 sm:$0xff]   ;;  %v2070_v56 = vld [vmem:[#allocation6 + $0x1e0] ss:$8 sps:$4 sm:$0xff]  }
  0x53   :  { %v2045_v36 = vld [vmem:[#allocation6 + $0xd4] ss:$8 sps:$4 sm:$0xff]   ;;  %v2040_v37 = vld [vmem:[#allocation6 + $0x130] ss:$8 sps:$4 sm:$0xff]   ;;  %v2081_v61 = vld [vmem:[#allocation6 + $0x1c4] ss:$8 sps:$4 sm:$0xff]  }
  0x54   :  { %v2043_v38 = vld [vmem:[#allocation6 + $0xd0] ss:$8 sps:$4 sm:$0xff]   ;;  %v2079_v62 = vld [vmem:[#allocation6 + $0x1c0] ss:$8 sps:$4 sm:$0xff]   ;;  %v2090_v5 = vld [vmem:[#allocation6 + $0x194] ss:$8 sps:$4 sm:$0xff]  }
  0x55   :  { %v2088_v6 = vld [vmem:[#allocation6 + $0x190] ss:$8 sps:$4 sm:$0xff]  }
  0xbc   :  { %v151_v40 = vpop.permute.xlu1 %150  ;;  %v143_v41 = vpop.permute.xlu0 %142 }
  0xbd   :  { %vm155_vm2 = vcmp.eq.s32.totalorder %v151_v40, %v140_v42  ;;  %vm147_vm3 = vcmp.eq.s32.totalorder %v143_v41, %v140_v42  ;;  %v2051_v40 = vld [vmem:[#allocation6 + $0xc4] ss:$8 sps:$4 sm:$0xff]   ;;  %v2046_v41 = vld [vmem:[#allocation6 + $0x120] ss:$8 sps:$4 sm:$0xff]  }
  0xbe   :  { %vm157_vm6 = vmor %vm147_vm3, %vm155_vm2  ;;  %vm1305_vm2 = vcmask 1041409   ;;  %vm1307_vm3 = vcmask 1043459  }
  0xc0   :  { %v154_v43 = vpop.permute.xlu1 %153  ;;  %v146_v44 = vpop.permute.xlu0 %145 }
  0xc1   :  { %vm156_vm4 = vcmp.eq.s32.totalorder %v154_v43, %v140_v42  ;;  %vm148_vm5 = vcmp.eq.s32.totalorder %v146_v44, %v140_v42  ;;  %v2049_v42 = vld [vmem:[#allocation6 + $0xc0] ss:$8 sps:$4 sm:$0xff]   ;;  %v2054_v43 = vld [vmem:[#allocation6 + $0x114] ss:$8 sps:$4 sm:$0xff]  }
  0xc2   :  { %vm158_vm7 = vmor %vm148_vm5, %vm156_vm4  ;;  %v2057_v44 = vld [vmem:[#allocation6 + $0xb4] ss:$8 sps:$4 sm:$0xff]   ;;  %vm1309_vm4 = vcmask 1045509   ;;  %vm1311_vm5 = vcmask 1047559  }
  0xc4   :  { %v166_v45 = vpop.permute.xlu1 %165  ;;  %v163_v46 = vpop.permute.xlu0 %162 }
  0xc5   :  { %vm168_vm8 = vcmp.eq.s32.totalorder %v166_v45, 1  ;;  %vm167_vm9 = vcmp.eq.s32.totalorder %v163_v46, 1  ;;  %v2052_v45 = vld [vmem:[#allocation6 + $0x110] ss:$8 sps:$4 sm:$0xff]  }
  0xc6   :  { %vm170_vm10 = vmand %vm158_vm7, %vm168_vm8  ;;  %v2055_v46 = vld [vmem:[#allocation6 + $0xb0] ss:$8 sps:$4 sm:$0xff]  }
  0xc7   :  { %v1782_v50 = vsel %vm170_vm10, 1.0, %v2346_v49  ;;  %vm169_vm11 = vmand %vm157_vm6, %vm167_vm9 }
  0xc8   :  { %v1781_v51 = vsel %vm169_vm11, 1.0, %v2346_v49  ;;  %v2063_v49 = vld [vmem:[#allocation6 + $0xa4] ss:$8 sps:$4 sm:$0xff]  }
  0xc9   :  { %v2474_v52 = vpack.c.bf16 %v1782_v50, %v1781_v51  ;;  %v2061_v50 = vld [vmem:[#allocation6 + $0xa0] ss:$8 sps:$4 sm:$0xff]   ;;  %v2066_v51 = vld [vmem:[#allocation6 + $0x1f4] ss:$8 sps:$4 sm:$0xff]  }
  0xcb   :  { %1807 = vmatmul.mubr.msk.bf16.vlgmr.msra.gmra.mxu1 %vm320_vm12, %v2474_v52  ;;  %1809 = vmatmul.mubr.msk.bf16.vlgmr.msra.gmra.mxu0 %vm320_vm12, %v2474_v52 }
  0xcc   :  { %378 = vmatpush1.bf16.msra.mxu1 %v1801_v35  ;;  %399 = vmatprep.mubr.bf16.mxu1 %v2345_v0  ;;  %v2042_v35 = vld [vmem:[#allocation6 + $0x134] ss:$8 sps:$4 sm:$0xff]  }
  0xcd   :  { %379 = vmatprep.subr.bf16.mxu1 %v1794_v53  ;;  %905 = vmatpush1.bf16.msra.mxu0 %v1998_v54  ;;  %v2069_v53 = vld [vmem:[#allocation6 + $0x94] ss:$8 sps:$4 sm:$0xff]   ;;  %v2067_v54 = vld [vmem:[#allocation6 + $0x90] ss:$8 sps:$4 sm:$0xff]  }
  0xce   :  { %906 = vmatprep.subr.bf16.mxu0 %v2003_v57  ;;  %v2075_v57 = vld [vmem:[#allocation6 + $0x84] ss:$8 sps:$4 sm:$0xff]  }
  0xd0   :  { %380 = vmatpush1.bf16.msra.mxu1 %v1793_v58  ;;  %v2073_v58 = vld [vmem:[#allocation6 + $0x80] ss:$8 sps:$4 sm:$0xff]  }
  0xd1   :  { %381 = vmatprep.subr.bf16.mxu1 %v1786_v59  ;;  %907 = vmatpush1.bf16.msra.mxu0 %v2001_v60  ;;  %v2078_v59 = vld [vmem:[#allocation6 + $0x1d4] ss:$8 sps:$4 sm:$0xff]   ;;  %v2076_v60 = vld [vmem:[#allocation6 + $0x1d0] ss:$8 sps:$4 sm:$0xff]  }
  0xd2   :  { %908 = vmatprep.subr.bf16.mxu0 %v2006_v63  ;;  %v2082_v63 = vld [vmem:[#allocation6 + $0x1b0] ss:$8 sps:$4 sm:$0xff]  }
  0xd4   :  { %382 = vmatpush1.bf16.msra.mxu1 %v1785_v1  ;;  %v2084_v1 = vld [vmem:[#allocation6 + $0x1b4] ss:$8 sps:$4 sm:$0xff]  }
  0xd5   :  { %463 = vmatprep.subr.bf16.mxu1 %v1806_v3  ;;  %909 = vmatpush1.bf16.msra.mxu0 %v2004_v4  ;;  %v2087_v3 = vld [vmem:[#allocation6 + $0x1a4] ss:$8 sps:$4 sm:$0xff]   ;;  %v2085_v4 = vld [vmem:[#allocation6 + $0x1a0] ss:$8 sps:$4 sm:$0xff]  }
  0xd6   :  { %910 = vmatprep.subr.bf16.mxu0 %v2009_v7  ;;  %v2093_v7 = vld [vmem:[#allocation6 + $0x184] ss:$8 sps:$4 sm:$0xff]  }
  0xd7   :  { %1808 = vmatmul.mubr.msk.bf16.vlgmr.msra.gmra.mxu1 %vm320_vm12, %v2474_v52 }
  0xd8   :  { %464 = vmatpush1.bf16.msra.mxu1 %v1805_v8  ;;  %485 = vmatprep.mubr.bf16.mxu1 %v2345_v0  ;;  %v2024_v0 = vld [vmem:[#allocation6 + $0x164] ss:$8 sps:$4 sm:$0xff]   ;;  %v2091_v8 = vld [vmem:[#allocation6 + $0x180] ss:$8 sps:$4 sm:$0xff]  }
  0xd9   :  { %465 = vmatprep.subr.bf16.mxu1 %v1798_v9  ;;  %911 = vmatpush1.bf16.msra.mxu0 %v2007_v10  ;;  %v2096_v9 = vld [vmem:[#allocation8 + $0x74] ss:$8 sps:$4 sm:$0xff]  }
  0xda   :  { %912 = vmatprep.subr.bf16.mxu0 %v2012_v13 }
  0xdc   :  { %466 = vmatpush1.bf16.msra.mxu1 %v1797_v14 }
  0xdd   :  { %467 = vmatprep.subr.bf16.mxu1 %v1790_v15  ;;  %913 = vmatpush1.bf16.msra.mxu0 %v2010_v16 }
  0xde   :  { %914 = vmatprep.subr.bf16.mxu0 %v2015_v17 }
  0xe0   :  { %468 = vmatpush1.bf16.msra.mxu1 %v1789_v18 }
  0xe1   :  { %915 = vmatpush1.bf16.msra.mxu0 %v2013_v19  ;;  %947 = vmatprep.subr.bf16.mxu1 %v2018_v20 }
  0xe2   :  { %916 = vmatprep.subr.bf16.mxu0 %v2021_v21 }
  0xe3   :  { %1810 = vmatmul.mubr.msk.bf16.vlgmr.msra.gmra.mxu1 %vm320_vm12, %v2474_v52  ;;  %v2064_v52 = vld [vmem:[#allocation6 + $0x1f0] ss:$8 sps:$4 sm:$0xff]  }
  0xe4   :  { %948 = vmatpush1.bf16.msra.mxu1 %v2016_v22 }
  0xe5   :  { %917 = vmatpush1.bf16.msra.mxu0 %v2019_v23  ;;  %949 = vmatprep.subr.bf16.mxu1 %v2024_v0  ;;  %v2094_v23 = vld [vmem:[#allocation8 + $0x70] ss:$8 sps:$4 sm:$0xff]  }
  0xe6   :  { %918 = vmatprep.subr.bf16.mxu0 %v2027_v24  ;;  %v2099_v24 = vld [vmem:[#allocation8 + $0x64] ss:$8 sps:$4 sm:$0xff]  }
  0xe8   :  { %950 = vmatpush1.bf16.msra.mxu1 %v2022_v25 }
  0xe9   :  { %919 = vmatpush1.bf16.msra.mxu0 %v2025_v26  ;;  %951 = vmatprep.subr.bf16.mxu1 %v2030_v27  ;;  %v2097_v26 = vld [vmem:[#allocation8 + $0x60] ss:$8 sps:$4 sm:$0xff]  }
  0xea   :  { %920 = vmatprep.subr.bf16.mxu0 %v2033_v28  ;;  %v2102_v28 = vld [vmem:[#allocation8 + $0x54] ss:$8 sps:$4 sm:$0xff]  }
  0xec   :  { %952 = vmatpush1.bf16.msra.mxu1 %v2028_v29  ;;  %v2100_v29 = vld [vmem:[#allocation8 + $0x50] ss:$8 sps:$4 sm:$0xff]  }
  0xed   :  { %921 = vmatpush2.bf16.msra.mxu0 %v2031_v30  ;;  %953 = vmatprep.subr.bf16.mxu1 %v2036_v31  ;;  %v2105_v31 = vld [vmem:[#allocation8 + $0x44] ss:$8 sps:$4 sm:$0xff]  }
  0xee   :  { %922 = vmatprep.subr.bf16.mxu0 %v2039_v32  ;;  %v2103_v32 = vld [vmem:[#allocation8 + $0x40] ss:$8 sps:$4 sm:$0xff]  }
  0xf0   :  { %954 = vmatpush1.bf16.msra.mxu1 %v2034_v33 }
  0xf1   :  { %923 = vmatpush2.bf16.msra.mxu0 %v2037_v34  ;;  %955 = vmatprep.subr.bf16.mxu1 %v2042_v35  ;;  %v2108_v34 = vld [vmem:[#allocation8 + $0x34] ss:$8 sps:$4 sm:$0xff]  }
  0xf2   :  { %924 = vmatprep.subr.bf16.mxu0 %v2045_v36  ;;  %v2106_v36 = vld [vmem:[#allocation8 + $0x30] ss:$8 sps:$4 sm:$0xff]  }
  0xf4   :  { %956 = vmatpush1.bf16.msra.mxu1 %v2040_v37 }
  0xf5   :  { %925 = vmatpush2.bf16.msra.mxu0 %v2043_v38  ;;  %957 = vmatprep.subr.bf16.mxu1 %v2048_v39  ;;  %v2111_v38 = vld [vmem:[#allocation8 + $0x24] ss:$8 sps:$4 sm:$0xff]  }
  0xf6   :  { %926 = vmatprep.subr.bf16.mxu0 %v2051_v40  ;;  %v2109_v40 = vld [vmem:[#allocation8 + $0x20] ss:$8 sps:$4 sm:$0xff]  }
  0xf8   :  { %958 = vmatpush1.bf16.msra.mxu1 %v2046_v41 }
  0xf9   :  { %927 = vmatpush2.bf16.msra.mxu0 %v2049_v42  ;;  %959 = vmatprep.subr.bf16.mxu1 %v2054_v43  ;;  %v2114_v43 = vld [vmem:[#allocation8 + $0x14] ss:$8 sps:$4 sm:$0xff]  }
  0xfa   :  { %928 = vmatprep.subr.bf16.mxu0 %v2057_v44 }
  0xfc   :  { %960 = vmatpush1.bf16.msra.mxu1 %v2052_v45 }
  0xfd   :  { %929 = vmatpush2.bf16.msra.mxu0 %v2055_v46  ;;  %961 = vmatprep.subr.bf16.mxu1 %v2060_v47 }
  0xfe   :  { %930 = vmatprep.subr.bf16.mxu0 %v2063_v49 }
 0x100   :  { %962 = vmatpush1.bf16.msra.mxu1 %v2058_v48  ;;  %v2112_v48 = vld [vmem:[#allocation8 + $0x10] ss:$8 sps:$4 sm:$0xff]  }
 0x101   :  { %931 = vmatpush2.bf16.msra.mxu0 %v2061_v50  ;;  %963 = vmatprep.subr.bf16.mxu1 %v2066_v51  ;;  %v2117_v50 = vld [vmem:[#allocation8 + $0x4] ss:$8 sps:$4 sm:$0xff]   ;;  %v2115_v51 = vld [vmem:[#allocation8] ss:$8 sps:$4 sm:$0xff]  }
 0x102   :  { %932 = vmatprep.subr.bf16.mxu0 %v2069_v53  ;;  %v2118_v53 = vld [vmem:[#allocation8 + $0xf0] ss:$8 sps:$4 sm:$0xff]  }
 0x104   :  { %964 = vmatpush2.bf16.msra.mxu1 %v2064_v52  ;;  %v2120_v52 = vld [vmem:[#allocation8 + $0xf4] ss:$8 sps:$4 sm:$0xff]  }
 0x105   :  { %933 = vmatpush2.bf16.msra.mxu0 %v2067_v54  ;;  %965 = vmatprep.subr.bf16.mxu1 %v2072_v55  ;;  %v2123_v54 = vld [vmem:[#allocation8 + $0xe4] ss:$8 sps:$4 sm:$0xff]   ;;  %v2121_v55 = vld [vmem:[#allocation8 + $0xe0] ss:$8 sps:$4 sm:$0xff]  }
 0x106   :  { %934 = vmatprep.subr.bf16.mxu0 %v2075_v57  ;;  %v2124_v57 = vld [vmem:[#allocation8 + $0xd0] ss:$8 sps:$4 sm:$0xff]  }
 0x108   :  { %966 = vmatpush2.bf16.msra.mxu1 %v2070_v56  ;;  %v2126_v56 = vld [vmem:[#allocation8 + $0xd4] ss:$8 sps:$4 sm:$0xff]  }
 0x109   :  { %935 = vmatpush2.bf16.msra.mxu0 %v2073_v58  ;;  %967 = vmatprep.subr.bf16.mxu1 %v2078_v59  ;;  %v2129_v58 = vld [vmem:[#allocation8 + $0xc4] ss:$8 sps:$4 sm:$0xff]   ;;  %v2127_v59 = vld [vmem:[#allocation8 + $0xc0] ss:$8 sps:$4 sm:$0xff]  }
 0x10a   :  { %1208 = vmatprep.subr.bf16.mxu0 %v2096_v9  ;;  %v2145_v9 = vld [vmem:[#allocation9 + $0x60] ss:$8 sps:$4 sm:$0xff]  }
 0x10c   :  { %968 = vmatpush2.bf16.msra.mxu1 %v2076_v60  ;;  %v2132_v60 = vld [vmem:[#allocation8 + $0xb4] ss:$8 sps:$4 sm:$0xff]  }
 0x10d   :  { %969 = vmatprep.subr.bf16.mxu1 %v2081_v61  ;;  %v2130_v61 = vld [vmem:[#allocation8 + $0xb0] ss:$8 sps:$4 sm:$0xff]  }
 0x110   :  { %970 = vmatpush2.bf16.msra.mxu1 %v2079_v62  ;;  %v2135_v62 = vld [vmem:[#allocation8 + $0xa4] ss:$8 sps:$4 sm:$0xff]  }
 0x111   :  { %971 = vmatprep.subr.bf16.mxu1 %v2084_v1  ;;  %v2138_v1 = vld [vmem:[#allocation8 + $0x94] ss:$8 sps:$4 sm:$0xff]  }
 0x114   :  { %972 = vmatpush2.bf16.msra.mxu1 %v2082_v63  ;;  %v2133_v63 = vld [vmem:[#allocation8 + $0xa0] ss:$8 sps:$4 sm:$0xff]  }
 0x115   :  { %973 = vmatprep.subr.bf16.mxu1 %v2087_v3  ;;  %v2136_v3 = vld [vmem:[#allocation8 + $0x90] ss:$8 sps:$4 sm:$0xff]  }
 0x118   :  { %974 = vmatpush2.bf16.msra.mxu1 %v2085_v4  ;;  %v2141_v4 = vld [vmem:[#allocation8 + $0x84] ss:$8 sps:$4 sm:$0xff]  }
 0x119   :  { %975 = vmatprep.subr.bf16.mxu1 %v2090_v5  ;;  %v2139_v5 = vld [vmem:[#allocation8 + $0x80] ss:$8 sps:$4 sm:$0xff]  }
 0x11c   :  { %976 = vmatpush2.bf16.msra.mxu1 %v2088_v6  ;;  %v2142_v6 = vld [vmem:[#allocation9 + $0x70] ss:$8 sps:$4 sm:$0xff]  }
 0x11d   :  { %977 = vmatprep.subr.bf16.mxu1 %v2093_v7  ;;  %v2144_v7 = vld [vmem:[#allocation9 + $0x74] ss:$8 sps:$4 sm:$0xff]  }
 0x120   :  { %978 = vmatpush2.bf16.msra.mxu1 %v2091_v8  ;;  %v2147_v8 = vld [vmem:[#allocation9 + $0x64] ss:$8 sps:$4 sm:$0xff]  }
 0x121   :  { %1537 = vmatprep.subr.bf16.mxu1 %v2144_v7  ;;  %v2190_v7 = vld [vmem:[#allocation11 + $0x78] sm:$0xff]  }
 0x18b   :  { %v358_v10 = vpop.f32.mrf.mxu1  ;;  %v444_v11 = vpop.f32.mrf.mxu0 }
 0x18c   :  { %v496_v21 = vmul.f32 %v444_v11, %v358_v10  ;;  %v2150_v10 = vld [vmem:[#allocation9 + $0x54] ss:$8 sps:$4 sm:$0xff]   ;;  %v2148_v11 = vld [vmem:[#allocation9 + $0x50] ss:$8 sps:$4 sm:$0xff]  }
 0x18d   :  { %v360_v12 = vpop.f32.mrf.mxu1  ;;  %v446_v13 = vpop.f32.mrf.mxu0 }
 0x18e   :  { %v497_v19 = vmul.f32 %v446_v13, %v360_v12  ;;  %v2153_v12 = vld [vmem:[#allocation9 + $0x44] ss:$8 sps:$4 sm:$0xff]   ;;  %v2151_v13 = vld [vmem:[#allocation9 + $0x40] ss:$8 sps:$4 sm:$0xff]  }
 0x18f   :  { %v362_v14 = vpop.f32.mrf.mxu1  ;;  %v448_v15 = vpop.f32.mrf.mxu0 }
 0x190   :  { %v500_v16 = vmul.f32 %v448_v15, %v362_v14  ;;  %v2487_v15 = vsub.s32 1, %v2445_v2 }
 0x191   :  { %v364_v17 = vpop.f32.mrf.mxu1  ;;  %v450_v18 = vpop.f32.mrf.mxu0 }
 0x192   :  { %v501_v20 = vmul.f32 %v450_v18, %v364_v17  ;;  %v504_v0 = vpack.c.bf16 %v500_v16, %v496_v21  ;;  %v2490_v16 = vsub.s32 0, %v2445_v2  ;;  %v572_v18 = vld [vmem:[%s2520_s5] sm:$0x3] }
 0x194   :  { %v505_v22 = vpack.c.bf16 %v501_v20, %v497_v19  ;;  %v581_v19 = vrot.slane %v572_v18, %v2487_v15  ;;  %v577_v20 = vrot.slane %v572_v18, %v2490_v16  ;;  %v2199_v18 = vld [vmem:[#allocation11 + $0x18] sm:$0xff]  }
 0x196   :  { %936 = vmatprep.mubr.bf16.mxu0 %v505_v22 }
 0x197   :  { %v401_v25 = vpop.f32.mrf.mxu1  ;;  %937 = vmatmul.mubr.bf16.vlgmr.msra.gmra.mxu0 %v504_v0 }
 0x198   :  { %1209 = vmatpush1.bf16.msra.mxu0 %v2094_v23 }
 0x199   :  { %v403_v27 = vpop.f32.mrf.mxu1  ;;  %1210 = vmatprep.subr.bf16.mxu0 %v2099_v24 }
 0x19b   :  { %v405_v30 = vpop.f32.mrf.mxu1 }
 0x19c   :  { %1211 = vmatpush1.bf16.msra.mxu0 %v2097_v26 }
 0x19d   :  { %1212 = vmatprep.subr.bf16.mxu0 %v2102_v28  ;;  %v407_v33 = vpop.f32.mrf.mxu1 }
 0x1a0   :  { %1213 = vmatpush1.bf16.msra.mxu0 %v2100_v29 }
 0x1a1   :  { %1214 = vmatprep.subr.bf16.mxu0 %v2105_v31 }
 0x1a3   :  { %v487_v35 = vpop.f32.mrf.mxu1 }
 0x1a4   :  { %1215 = vmatpush1.bf16.msra.mxu0 %v2103_v32  ;;  %v498_v46 = vmul.f32 %v487_v35, %v401_v25 }
 0x1a5   :  { %v489_v37 = vpop.f32.mrf.mxu1  ;;  %1216 = vmatprep.subr.bf16.mxu0 %v2108_v34 }
 0x1a6   :  { %v499_v44 = vmul.f32 %v489_v37, %v403_v27 }
 0x1a7   :  { %v491_v39 = vpop.f32.mrf.mxu1 }
 0x1a8   :  { %1217 = vmatpush1.bf16.msra.mxu0 %v2106_v36  ;;  %v502_v41 = vmul.f32 %v491_v39, %v405_v30 }
 0x1a9   :  { %v493_v42 = vpop.f32.mrf.mxu1  ;;  %1218 = vmatprep.subr.bf16.mxu0 %v2111_v38 }
 0x1aa   :  { %v503_v45 = vmul.f32 %v493_v42, %v407_v33  ;;  %v506_v49 = vpack.c.bf16 %v502_v41, %v498_v46  ;;  %v2159_v46 = vld [vmem:[#allocation9 + $0x24] ss:$8 sps:$4 sm:$0xff]  }
 0x1ac   :  { %v507_v47 = vpack.c.bf16 %v503_v45, %v499_v44  ;;  %1219 = vmatpush1.bf16.msra.mxu0 %v2109_v40  ;;  %v2156_v44 = vld [vmem:[#allocation9 + $0x34] ss:$8 sps:$4 sm:$0xff]   ;;  %v2154_v45 = vld [vmem:[#allocation9 + $0x30] ss:$8 sps:$4 sm:$0xff]  }
 0x1ad   :  { %1220 = vmatprep.subr.bf16.mxu0 %v2114_v43 }
 0x1ae   :  { %979 = vmatprep.mubr.bf16.mxu1 %v507_v47  ;;  %v2157_v47 = vld [vmem:[#allocation9 + $0x20] ss:$8 sps:$4 sm:$0xff]  }
 0x1af   :  { %980 = vmatmul.mubr.bf16.vlgmr.msra.gmra.mxu1 %v506_v49  ;;  %v2160_v49 = vld [vmem:[#allocation9 + $0x10] ss:$8 sps:$4 sm:$0xff]  }
 0x1b0   :  { %1221 = vmatpush1.bf16.msra.mxu0 %v2112_v48  ;;  %1538 = vmatpush1.bf16.msra.mxu1 %v2142_v6  ;;  %v2162_v48 = vld [vmem:[#allocation9 + $0x14] ss:$8 sps:$4 sm:$0xff]   ;;  %v2187_v6 = vld [vmem:[#allocation9 + $0x80] ss:$8 sps:$4 sm:$0xff]  }
 0x1b1   :  { %1222 = vmatprep.subr.bf16.mxu0 %v2117_v50  ;;  %1539 = vmatprep.subr.bf16.mxu1 %v2147_v8  ;;  %v2165_v50 = vld [vmem:[#allocation9 + $0x4] ss:$8 sps:$4 sm:$0xff]   ;;  %v2191_v8 = vld [vmem:[#allocation11 + $0x38] sm:$0xff]  }
 0x1b4   :  { %1223 = vmatpush1.bf16.msra.mxu0 %v2115_v51  ;;  %1540 = vmatpush1.bf16.msra.mxu1 %v2145_v9  ;;  %v2163_v51 = vld [vmem:[#allocation9] ss:$8 sps:$4 sm:$0xff]   ;;  %v2192_v9 = vld [vmem:[#allocation11 + $0x70] sm:$0xff]  }
 0x1b5   :  { %1224 = vmatprep.subr.bf16.mxu0 %v2120_v52  ;;  %1541 = vmatprep.subr.bf16.mxu1 %v2150_v10  ;;  %v2168_v52 = vld [vmem:[#allocation9 + $0xf4] ss:$8 sps:$4 sm:$0xff]  }
 0x1b6   :  { %v2193_v10 = vld [vmem:[#allocation11 + $0x30] sm:$0xff]  }
 0x1b8   :  { %1225 = vmatpush2.bf16.msra.mxu0 %v2118_v53  ;;  %1542 = vmatpush1.bf16.msra.mxu1 %v2148_v11  ;;  %v2166_v53 = vld [vmem:[#allocation9 + $0xf0] ss:$8 sps:$4 sm:$0xff]   ;;  %v2194_v11 = vld [vmem:[#allocation11 + $0x68] sm:$0xff]  }
 0x1b9   :  { %1226 = vmatprep.subr.bf16.mxu0 %v2123_v54  ;;  %1543 = vmatprep.subr.bf16.mxu1 %v2153_v12  ;;  %v2171_v54 = vld [vmem:[#allocation9 + $0xe4] ss:$8 sps:$4 sm:$0xff]  }
 0x1ba   :  { %v2195_v12 = vld [vmem:[#allocation11 + $0x28] sm:$0xff]  }
 0x1bc   :  { %1227 = vmatpush2.bf16.msra.mxu0 %v2121_v55  ;;  %1544 = vmatpush1.bf16.msra.mxu1 %v2151_v13  ;;  %v2169_v55 = vld [vmem:[#allocation9 + $0xe0] ss:$8 sps:$4 sm:$0xff]  }
 0x1bd   :  { %1228 = vmatprep.subr.bf16.mxu0 %v2126_v56  ;;  %1545 = vmatprep.subr.bf16.mxu1 %v2156_v44  ;;  %v2347_v56 = vmov -inf   ;;  %v2196_v13 = vld [vmem:[#allocation11 + $0x60] sm:$0xff]  }
 0x1be   :  { %115 = vst [vmem:[#allocation2] sm:$0xf] %v2347_v56 }
 0x1c0   :  { %1229 = vmatpush2.bf16.msra.mxu0 %v2124_v57  ;;  %1546 = vmatpush1.bf16.msra.mxu1 %v2154_v45  ;;  %v2174_v57 = vld [vmem:[#allocation9 + $0xd4] ss:$8 sps:$4 sm:$0xff]  }
 0x1c1   :  { %1230 = vmatprep.subr.bf16.mxu0 %v2129_v58  ;;  %1547 = vmatprep.subr.bf16.mxu1 %v2159_v46  ;;  %v2172_v58 = vld [vmem:[#allocation9 + $0xd0] ss:$8 sps:$4 sm:$0xff]  }
 0x1c4   :  { %1231 = vmatpush2.bf16.msra.mxu0 %v2127_v59  ;;  %1548 = vmatpush1.bf16.msra.mxu1 %v2157_v47  ;;  %v2177_v59 = vld [vmem:[#allocation9 + $0xc4] ss:$8 sps:$4 sm:$0xff]  }
 0x1c5   :  { %1232 = vmatprep.subr.bf16.mxu0 %v2132_v60  ;;  %1549 = vmatprep.subr.bf16.mxu1 %v2162_v48  ;;  %v2175_v60 = vld [vmem:[#allocation9 + $0xc0] ss:$8 sps:$4 sm:$0xff]  }
 0x1c8   :  { %1233 = vmatpush2.bf16.msra.mxu0 %v2130_v61  ;;  %1550 = vmatpush1.bf16.msra.mxu1 %v2160_v49  ;;  %v2180_v61 = vld [vmem:[#allocation9 + $0xb4] ss:$8 sps:$4 sm:$0xff]  }
 0x1c9   :  { %1234 = vmatprep.subr.bf16.mxu0 %v2135_v62  ;;  %1551 = vmatprep.subr.bf16.mxu1 %v2165_v50  ;;  %v2178_v62 = vld [vmem:[#allocation9 + $0xb0] ss:$8 sps:$4 sm:$0xff]   ;;  %v2349_v50 = vmov 1983009808  }
 0x1cc   :  { %1235 = vmatpush2.bf16.msra.mxu0 %v2133_v63  ;;  %1552 = vmatpush1.bf16.msra.mxu1 %v2163_v51  ;;  %v2183_v63 = vld [vmem:[#allocation9 + $0xa4] ss:$8 sps:$4 sm:$0xff]   ;;  %v1286_v51 = vunpack.c.l.s4 %v2349_v50 }
 0x1cd   :  { %1236 = vmatprep.subr.bf16.mxu0 %v2138_v1  ;;  %1553 = vmatprep.subr.bf16.mxu1 %v2168_v52  ;;  %v2181_v1 = vld [vmem:[#allocation9 + $0xa0] ss:$8 sps:$4 sm:$0xff]  }
 0x1d0   :  { %1237 = vmatpush2.bf16.msra.mxu0 %v2136_v3  ;;  %1554 = vmatpush2.bf16.msra.mxu1 %v2166_v53  ;;  %v2186_v3 = vld [vmem:[#allocation9 + $0x94] ss:$8 sps:$4 sm:$0xff]  }
 0x1d1   :  { %1238 = vmatprep.subr.bf16.mxu0 %v2141_v4  ;;  %1555 = vmatprep.subr.bf16.mxu1 %v2171_v54  ;;  %v2184_v4 = vld [vmem:[#allocation9 + $0x90] ss:$8 sps:$4 sm:$0xff]  }
 0x1d4   :  { %1239 = vmatpush2.bf16.msra.mxu0 %v2139_v5  ;;  %1556 = vmatpush2.bf16.msra.mxu1 %v2169_v55  ;;  %v2189_v5 = vld [vmem:[#allocation9 + $0x84] ss:$8 sps:$4 sm:$0xff]  }
 0x1d5   :  { %1557 = vmatprep.subr.bf16.mxu1 %v2174_v57  ;;  %1957 = vmatprep.subr.bf16.mxu0 %v2190_v7 }
 0x1d8   :  { %1558 = vmatpush2.bf16.msra.mxu1 %v2172_v58  ;;  %v1287_v58 = vunpack.c.0.s8 %v1286_v51 }
 0x1d9   :  { %1559 = vmatprep.subr.bf16.mxu1 %v2177_v59 }
 0x1dc   :  { %1560 = vmatpush2.bf16.msra.mxu1 %v2175_v60 }
 0x1dd   :  { %1561 = vmatprep.subr.bf16.mxu1 %v2180_v61 }
 0x1e0   :  { %1562 = vmatpush2.bf16.msra.mxu1 %v2178_v62 }
 0x1e1   :  { %1563 = vmatprep.subr.bf16.mxu1 %v2183_v63 }
 0x1e4   :  { %1564 = vmatpush2.bf16.msra.mxu1 %v2181_v1  ;;  %v1290_v1 = vsub.s32 %v1287_v58, %v2445_v2  ;;  %v2201_v2 = vld [vmem:[#allocation11 + $0x10] sm:$0xff]  }
 0x1e5   :  { %1565 = vmatprep.subr.bf16.mxu1 %v2186_v3 }
 0x1e8   :  { %1566 = vmatpush2.bf16.msra.mxu1 %v2184_v4 }
 0x1e9   :  { %1567 = vmatprep.subr.bf16.mxu1 %v2189_v5 }
 0x1ec   :  { %1568 = vmatpush2.bf16.msra.mxu1 %v2187_v6 }
 0x257   :  { %v938_v14 = vpop.f32.mrf.mxu0 }
 0x258   :  { %v939_v0 = vadd.f32 %v938_v14, %v577_v20  ;;  %v2197_v14 = vld [vmem:[#allocation11 + $0x20] sm:$0xff]  }
 0x259   :  { %v940_v17 = vpop.f32.mrf.mxu0 }
 0x25a   :  { %v941_v23 = vadd.f32 %v940_v17, %v581_v19  ;;  %v2198_v17 = vld [vmem:[#allocation11 + $0x58] sm:$0xff]  }
 0x25b   :  { %v942_v21 = vpop.f32.mrf.mxu0 }
 0x25c   :  { %v943_v26 = vadd.f32 %v942_v21, %v577_v20  ;;  %v1036_v20 = vld [vmem:[%s2522_s7] sm:$0x3] }
 0x25d   :  { %v944_v24 = vpop.f32.mrf.mxu0  ;;  %v1041_v21 = vrot.slane %v1036_v20, %v2490_v16 }
 0x25e   :  { %v945_v30 = vadd.f32 %v944_v24, %v581_v19  ;;  %v2200_v19 = vld [vmem:[#allocation11 + $0x50] sm:$0xff]  }
 0x26f   :  { %v981_v22 = vpop.f32.mrf.mxu1 }
 0x270   :  { %v982_v28 = vadd.f32 %v981_v22, %v939_v0  ;;  %v1045_v22 = vrot.slane %v1036_v20, %v2487_v15  ;;  %v2203_v20 = vld [vmem:[#allocation11 + $0x8] sm:$0xff]  }
 0x271   :  { %v983_v25 = vpop.f32.mrf.mxu1 }
 0x272   :  { %v984_v27 = vadd.f32 %v983_v25, %v941_v23  ;;  %v994_v36 = vmul.f32 0.01, %v982_v28  ;;  %vm990_vm15 = vcmp.gt.f32.partialorder %v982_v28, 0.0  ;;  %v2348_v23 = vmov -1e+30  }
 0x273   :  { %v985_v29 = vpop.f32.mrf.mxu1  ;;  %v134_v0 = vsel %vm133_vm1, 0.0, %v2348_v23  ;;  %v1365_v23 = vld [vmem:[%s2524_s9] sm:$0x3] }
 0x274   :  { %v986_v31 = vadd.f32 %v985_v29, %v943_v26  ;;  %v995_v33 = vmul.f32 0.01, %v984_v27  ;;  %vm991_vm14 = vcmp.gt.f32.partialorder %v984_v27, 0.0  ;;  %v998_v41 = vsel %vm990_vm15, %v982_v28, %v994_v36 }
 0x275   :  { %v987_v32 = vpop.f32.mrf.mxu1 }
 0x276   :  { %vm992_vm13 = vcmp.gt.f32.partialorder %v986_v31, 0.0  ;;  %v996_v34 = vmul.f32 0.01, %v986_v31  ;;  %v988_v35 = vadd.f32 %v987_v32, %v945_v30  ;;  %v999_v39 = vsel %vm991_vm14, %v984_v27, %v995_v33 }
 0x278   :  { %vm993_vm0 = vcmp.gt.f32.partialorder %v988_v35, 0.0  ;;  %v997_v37 = vmul.f32 0.01, %v988_v35  ;;  %v1000_v38 = vsel %vm992_vm13, %v986_v31, %v996_v34 }
 0x279   :  { %v1002_v43 = vpack.c.bf16 %v1000_v38, %v998_v41 }
 0x27a   :  { %v1001_v40 = vsel %vm993_vm0, %v988_v35, %v997_v37 }
 0x27b   :  { %v1003_v42 = vpack.c.bf16 %v1001_v40, %v999_v39 }
 0x27d   :  { %1240 = vmatprep.mubr.bf16.mxu0 %v1003_v42 }
 0x27e   :  { %1241 = vmatmul.mubr.bf16.vlgmr.msra.gmra.mxu0 %v1002_v43 }
 0x27f   :  { %1958 = vmatpush3.bf16.msra.mxu0 %v2191_v8  ;;  %v1255_v8 = vld [vmem:[#allocation2] sm:$0xf] }
 0x280   :  { %1959 = vmatprep.subr.bf16.mxu0 %v2192_v9 }
 0x283   :  { %1960 = vmatpush3.bf16.msra.mxu0 %v2193_v10 }
 0x284   :  { %1961 = vmatprep.subr.bf16.mxu0 %v2194_v11 }
 0x287   :  { %1962 = vmatpush3.bf16.msra.mxu0 %v2195_v12 }
 0x288   :  { %1963 = vmatprep.subr.bf16.mxu0 %v2196_v13 }
 0x28b   :  { %1964 = vmatpush3.bf16.msra.mxu0 %v2197_v14 }
 0x28c   :  { %1965 = vmatprep.subr.bf16.mxu0 %v2198_v17 }
 0x28f   :  { %1966 = vmatpush3.bf16.msra.mxu0 %v2199_v18 }
 0x290   :  { %1967 = vmatprep.subr.bf16.mxu0 %v2200_v19  ;;  %v2202_v19 = vld [vmem:[#allocation11 + $0x48] sm:$0xff]  }
 0x293   :  { %1968 = vmatpush3.bf16.msra.mxu0 %v2201_v2 }
 0x294   :  { %1969 = vmatprep.subr.bf16.mxu0 %v2202_v19 }
 0x297   :  { %1970 = vmatpush3.bf16.msra.mxu0 %v2203_v20 }
 0x33e   :  { %v1242_v24 = vpop.f32.mrf.mxu0 }
 0x33f   :  { %v1243_v25 = vadd.f32 %v1242_v24, %v1041_v21  ;;  %v1374_v24 = vrot.slane %v1365_v23, %v2487_v15  ;;  %v1940_v15 = vld [vmem:[%s2526_s11] ss:$0 sm:$0xff] }
 0x340   :  { %v1244_v26 = vpop.f32.mrf.mxu0 }
 0x341   :  { %v1251_v27 = vadd.f32 %v1243_v25, %v134_v0  ;;  %v1245_v28 = vadd.f32 %v1244_v26, %v1045_v22 }
 0x342   :  { %v1246_v29 = vpop.f32.mrf.mxu0 }
 0x343   :  { %v1256_v30 = vrot.slane %v1251_v27, 4  ;;  %v1252_v31 = vadd.f32 %v1245_v28, %v134_v0  ;;  %v1247_v32 = vadd.f32 %v1246_v29, %v1041_v21  ;;  %v2204_v21 = vld [vmem:[#allocation11 + $0x40] sm:$0xff]  }
 0x344   :  { %v1248_v33 = vpop.f32.mrf.mxu0  ;;  %1971 = vmatprep.subr.bf16.mxu0 %v2204_v21 }
 0x345   :  { %v1257_v34 = vmax.f32 %v1251_v27, %v1256_v30  ;;  %v1262_v35 = vrot.slane %v1252_v31, 4  ;;  %v1253_v36 = vadd.f32 %v1247_v32, %v134_v0  ;;  %v1249_v37 = vadd.f32 %v1248_v33, %v1045_v22  ;;  %v2205_v22 = vld [vmem:[#allocation11] sm:$0xff]  }
 0x346   :  { %1972 = vmatpush3.bf16.msra.mxu0 %v2205_v22 }
 0x347   :  { %v1258_v38 = vrot.slane %v1257_v34, 2  ;;  %v1263_v39 = vmax.f32 %v1252_v31, %v1262_v35  ;;  %v1268_v40 = vrot.slane %v1253_v36, 4  ;;  %v1254_v41 = vadd.f32 %v1249_v37, %v134_v0 }
 0x348   :  { %v1370_v0 = vrot.slane %v1365_v23, %v2490_v16 }
 0x349   :  { %v1264_v42 = vrot.slane %v1263_v39, 2  ;;  %v1269_v43 = vmax.f32 %v1253_v36, %v1268_v40  ;;  %v1274_v44 = vrot.slane %v1254_v41, 4  ;;  %v1259_v45 = vmax.f32 %v1257_v34, %v1258_v38 }
 0x34b   :  { %v1265_v46 = vmax.f32 %v1263_v39, %v1264_v42  ;;  %v1270_v47 = vrot.slane %v1269_v43, 2  ;;  %v1275_v48 = vmax.f32 %v1254_v41, %v1274_v44  ;;  %v1260_v54 = vrot.slane %v1259_v45, 1 }
 0x34d   :  { %v1266_v49 = vrot.slane %v1265_v46, 1  ;;  %v1271_v52 = vmax.f32 %v1269_v43, %v1270_v47  ;;  %v1276_v53 = vrot.slane %v1275_v48, 2  ;;  %v1261_v60 = vmax.f32 %v1259_v45, %v1260_v54 }
 0x34f   :  { %v1272_v55 = vrot.slane %v1271_v52, 1  ;;  %v1277_v56 = vmax.f32 %v1275_v48, %v1276_v53  ;;  %v1267_v57 = vmax.f32 %v1265_v46, %v1266_v49 }
 0x351   :  { %v1278_v59 = vrot.slane %v1277_v56, 1  ;;  %v1273_v61 = vmax.f32 %v1271_v52, %v1272_v55  ;;  %v1284_v63 = vcombine.low %v1261_v60, %v1267_v57 }
 0x353   :  { %v1279_v62 = vmax.f32 %v1277_v56, %v1278_v59  ;;  %v1291_v5 = vrot.slane %v1284_v63, %v1290_v1 }
 0x355   :  { %v1292_v3 = vcombine.low %v1273_v61, %v1279_v62 }
 0x357   :  { %v1299_v4 = vrot.slane %v1292_v3, %v1290_v1 }
 0x359   :  { %v1304_v6 = vrot.slane %v1299_v4, 7 }
 0x35b   :  { %v1306_v7 = vsel %vm1305_vm2, %v1304_v6, %v1291_v5 }
 0x35c   :  { %v1308_v9 = vsel %vm1307_vm3, %v1304_v6, %v1306_v7 }
 0x35d   :  { %v1310_v10 = vsel %vm1309_vm4, %v1304_v6, %v1308_v9 }
 0x35e   :  { %v1312_v11 = vsel %vm1311_vm5, %v1304_v6, %v1310_v10 }
 0x35f   :  { %v1314_v12 = vmax.f32 %v1255_v8, %v1312_v11 }
 0x361   :  { %1315 = vst [vmem:[#allocation2] sm:$0xf] %v1314_v12 }
 0x368   :  { %v1907_v13 = vld.sshfl [vmem:[#allocation2] sm:$0x33 pattern:$0x76325410] }
 0x369   :  { %v1328_v14 = vcombine.high %v1907_v13, %v1907_v13  ;;  %v1331_v18 = vpack.c.bf16 %v1907_v13, %v1907_v13 }
 0x36b   :  { %v1332_v17 = vpack.c.bf16 %v1328_v14, %v1328_v14 }
 0x36d   :  { %1569 = vmatprep.mubr.bf16.mxu1 %v1332_v17 }
 0x36e   :  { %1570 = vmatmul.mubr.bf16.vlgmr.msra.gmra.mxu1 %v1331_v18 }
 0x42e   :  { %v1571_v25 = vpop.f32.mrf.mxu1 }
 0x42f   :  { %v1572_v26 = vadd.f32 %v1571_v25, %v1370_v0 }
 0x430   :  { %v1573_v27 = vpop.f32.mrf.mxu1 }
 0x431   :  { %vm1578_vm6 = vcmp.gt.f32.partialorder %v1572_v26, 0.0  ;;  %v1580_v28 = vmul.f32 0.01, %v1572_v26  ;;  %v1574_v29 = vadd.f32 %v1573_v27, %v1374_v24 }
 0x432   :  { %v1575_v30 = vpop.f32.mrf.mxu1 }
 0x433   :  { %vm1579_vm7 = vcmp.gt.f32.partialorder %v1574_v29, 0.0  ;;  %v1581_v31 = vmul.f32 0.01, %v1574_v29  ;;  %v1582_v32 = vsel %vm1578_vm6, %v1572_v26, %v1580_v28 }
 0x434   :  { %v1576_v33 = vpop.f32.mrf.mxu1  ;;  %v1584_v36 = vpack.c.bf16 %v1582_v32, %v1582_v32 }
 0x435   :  { %v1583_v34 = vsel %vm1579_vm7, %v1574_v29, %v1581_v31 }
 0x436   :  { %v1585_v35 = vpack.c.bf16 %v1583_v34, %v1583_v34 }
 0x438   :  { %1753 = vmatprep.mubr.bf16.mxu0 %v1585_v35 }
 0x439   :  { %1754 = vmatmul.mubr.bf16.vlgmr.msra.gmra.mxu0 %v1584_v36 }
 0x4f9   :  { %v1973_v37 = vpop.f32.mrf.mxu0 }
 0x4fb   :  { %v1974_v16 = vpop.f32.mrf.mxu0 }
 0x4fc   :  { %v1975_v38 = vadd.f32 %v1974_v16, %v1973_v37 }
 0x4fd   :  { %v1976_v39 = vpop.f32.mrf.mxu0 }
 0x4fe   :  { %v1756_v40 = vadd.f32 %v1975_v38, %v1940_v15 }
 0x4ff   :  { %v1977_v41 = vpop.f32.mrf.mxu0 }
 0x500   :  { %1761 = vst [vmem:[#allocation12] sm:$0x3] %v1756_v40 }
 0x501   :  { %2317 = shalt.err (!%p2314_p1)
}
 0x502   :  { %1771 = dma.vmem_to_hbm [thread:$0]  %s1769_s8, 32, %s2527_s12, [#allocation5]  }
 0x503   :  { %2332 = dma.done.wait [#allocation5], 32  }
 0x504   :  { %2333 = vsyncadd [#allocation5], 4294967264 }
 0x505   :  { %1775 = vsyncpa [#allocation4], 1 }
 0x506   :  { %1776 = vsyncpa [#allocation7], 1 }
 0x507   :  { %1777 = vsyncpa [#allocation10], 1 }
 0x508   :  { %1778 = vsyncpa [#allocation5], 1 }

</bundles_post_ra>
